<compile_context>
chip_gen: v7x
topology: tpu7x:2x2x1
jax: 0.10.0
libtpu: 0.0.40
codegen_flags: <defaults>
</compile_context>

<pallas_src>
import jax
import jax.numpy as jnp
from jax.experimental import pallas as pl
from jax.experimental.pallas import tpu as pltpu

# TODO(synk): `CharToVec` is not defined in the provided source; it is modeled
# as a deterministic learned embedding (vocab -> 5) applied in plain JAX glue.


def proofreader_kernel(x_ref,        # (B*L, P, Fp) f32  encoded chars (F padded to 8)
                       wih1_ref,     # (Fp, H) f32       sub_rnn W_ih^T (row-padded)
                       b1_ref,       # (1, H)  f32       sub_rnn b_ih + b_hh
                       whh1_ref,     # (H, H)  bf16      sub_rnn W_hh^T
                       wih2_ref,     # (H, H)  bf16      rnn W_ih^T
                       whh2_ref,     # (H, H)  bf16      rnn W_hh^T
                       b2_ref,       # (1, H)  f32       rnn b_ih + b_hh
                       wfc_ref,      # (H, O_pad) bf16   fc W^T (lane-padded)
                       bfc_ref,      # (1, O_pad) f32    fc b   (lane-padded)
                       out_ref):     # (B, O_pad) f32
    BL, P, _ = x_ref.shape
    B = out_ref.shape[0]
    L = BL // B
    H = whh1_ref.shape[0]

    # ---- sub_rnn: B*L-step recurrence; hidden (P, H) carried across the ----
    # ---- outer batch boundary, exactly as in the PyTorch code.          ----
    # Only weights needed by this phase are loaded here (live-range trimming).
    wih1 = wih1_ref[...]
    b1 = jnp.broadcast_to(b1_ref[...], (P, H))      # hoisted broadcast
    whh1 = whh1_ref[...]

    sub_rows = []                                   # last-timestep hidden per outer element
    h = jnp.zeros((P, H), dtype=jnp.float32)
    for i in range(BL):                             # static unroll: one basic block
        # Input projection: no dependence on h -> off the serial chain; the
        # scheduler overlaps it with neighbouring recurrence matmuls.
        proj = jnp.dot(x_ref[i], wih1, preferred_element_type=jnp.float32) + b1
        pre = proj + jnp.dot(h.astype(jnp.bfloat16), whh1,
                             preferred_element_type=jnp.float32)
        h = jnp.tanh(pre)                           # f32 tanh, f32-carried hidden
        if (i + 1) % L == 0:                        # last timestep of element i // L
            sub_rows.append(h)                      # kept as a value: zero VMEM stores

    # ---- top-RNN input projection (off the 5-step chain) --------------------
    wih2 = wih2_ref[...]
    b2 = jnp.broadcast_to(b2_ref[...], (P, H))
    proj2 = jnp.stack(
        [jnp.dot(r.astype(jnp.bfloat16), wih2,
                 preferred_element_type=jnp.float32) + b2
         for r in sub_rows],
        axis=0)                                     # (B, P, H), held in vregs

    # ---- top rnn over the P-length "sequence", batch = B ---------------------
    whh2 = whh2_ref[...]
    h2 = jnp.zeros((B, H), dtype=jnp.float32)
    for s in range(P):                              # static unroll, P = 5
        pre = proj2[:, s, :] + jnp.dot(h2.astype(jnp.bfloat16), whh2,
                                       preferred_element_type=jnp.float32)
        h2 = jnp.tanh(pre)

    # ---- fc: bf16 weights, f32 accumulation, lane-padded unmasked store ------
    out_ref[...] = (jnp.dot(h2.astype(jnp.bfloat16), wfc_ref[...],
                            preferred_element_type=jnp.float32) + bfc_ref[...])


def proofreader_forward(x_enc, params):
    """x_enc: (B, 5, L, 5) encoded input (PyTorch iteration order)."""
    B, P, L, F = x_enc.shape
    H = params["whh1_t"].shape[0]
    O = params["wfc_t"].shape[1]
    O_pad = ((O + 127) // 128) * 128
    F_pad = 8                                        # pad feature dim to one sublane tile

    # PyTorch iteration order: for each outer element b, step t = 0..L-1 with a
    # (5, 5) input slab and carried hidden.  Flatten to (B*L, P, F_pad).
    xt = jnp.transpose(x_enc, (0, 2, 1, 3)).reshape(B * L, P, F).astype(jnp.float32)
    x_pad = jnp.zeros((B * L, P, F_pad), jnp.float32).at[:, :, :F].set(xt)

    wih1 = jnp.zeros((F_pad, H), jnp.float32).at[:F, :].set(
        params["wih1_t"].astype(jnp.float32))
    b1 = params["b1"].astype(jnp.float32)
    whh1 = params["whh1_t"].astype(jnp.bfloat16)     # bf16 MXU operands,
    wih2 = params["wih2_t"].astype(jnp.bfloat16)     # f32 accumulation in-kernel
    whh2 = params["whh2_t"].astype(jnp.bfloat16)
    b2 = params["b2"].astype(jnp.float32)

    # fc weights/bias lane-padded to a 128-multiple output width; weights bf16.
    wfc = jnp.zeros((H, O_pad), jnp.bfloat16).at[:, :O].set(
        params["wfc_t"].astype(jnp.bfloat16))
    bfc = jnp.zeros((1, O_pad), jnp.float32).at[:, :O].set(params["bfc"])

    vmem = pl.BlockSpec(memory_space=pltpu.MemorySpace.VMEM)
    out_pad = pl.pallas_call(
        proofreader_kernel,
        out_shape=jax.ShapeDtypeStruct((B, O_pad), jnp.float32),
        in_specs=[vmem] * 9,
        out_specs=vmem,
    )(x_pad, wih1, b1, whh1, wih2, whh2, b2, wfc, bfc)
    return out_pad[:, :O]


def proofreader_reference(x_enc, params):
    """Pure-JAX f32 reference mirroring the PyTorch forward (for verification)."""
    B, P, L, F = x_enc.shape
    H = params["whh1_t"].shape[0]
    h_sub = jnp.zeros((P, H), jnp.float32)
    sub_outs = []
    for b in range(B):
        for t in range(L):
            xt = x_enc[b, :, t, :]                      # (5, 5)
            h_sub = jnp.tanh(xt @ params["wih1_t"]
                             + h_sub @ params["whh1_t"] + params["b1"])
        sub_outs.append(h_sub)
    sub_out = jnp.stack(sub_outs, axis=0)               # (B, 5, H)
    h = jnp.zeros((B, H), jnp.float32)
    for s in range(P):
        h = jnp.tanh(sub_out[:, s, :] @ params["wih2_t"]
                     + h @ params["whh2_t"] + params["b2"])
    return h @ params["wfc_t"] + params["bfc"]


def make_params(key, hidden_dim=128, output_size=32, vector_size=5, vocab=96):
    H, O, F = hidden_dim, output_size, vector_size
    ks = jax.random.split(key, 10)
    s1 = 1.0 / jnp.sqrt(H)
    u = lambda k, shape, s: jax.random.uniform(k, shape, jnp.float32, -s, s)
    return {
        "emb":    u(ks[0], (vocab, F), 1.0),
        "wih1_t": u(ks[1], (F, H), s1),
        "whh1_t": u(ks[2], (H, H), s1),
        "b1":     u(ks[3], (1, H), s1),
        "wih2_t": u(ks[4], (H, H), s1),   # rnn input size = sub_rnn_output = 128 = H
        "whh2_t": u(ks[5], (H, H), s1),
        "b2":     u(ks[6], (1, H), s1),
        "wfc_t":  u(ks[7], (H, O), s1),
        "bfc":    u(ks[8], (1, O), s1),
    }


if __name__ == "__main__":
    key = jax.random.PRNGKey(0)
    B, P, L = 2, 5, 8          # outer batch, inner batch (fixed 5), sub-seq len
    hidden_dim, output_size, vocab = 128, 32, 96

    kp, kx = jax.random.split(key)
    params = make_params(kp, hidden_dim, output_size, vector_size=5, vocab=vocab)

    # integer "character" input, shape (B, 5, L)
    x_chars = jax.random.randint(kx, (B, P, L), 0, vocab, dtype=jnp.int32)
    # encoder (CharToVec stand-in): embedding lookup in plain JAX glue
    x_enc = params["emb"][x_chars]                       # (B, 5, L, 5)

    out = proofreader_forward(x_enc, params)
    out = jax.block_until_ready(out)

    ref = proofreader_reference(x_enc, params)
    assert out.shape == (B, output_size)
    # Recurrent and fc matmuls use bf16 MXU operands (f32 accumulation), so
    # compare against the f32 reference with a correspondingly relaxed tolerance.
    assert jnp.allclose(out, ref, atol=3e-2, rtol=3e-2), "mismatch vs reference"

    print("KERNEL_OK")
</pallas_src>

<mosaic_0001>
module attributes {stable_mosaic.version = 11 : i64} {
  func.func @proofreader_kernel(%arg0: memref<16x5x8xf32, #tpu.memory_space<vmem>>, %arg1: memref<8x128xf32, #tpu.memory_space<vmem>>, %arg2: memref<1x128xf32, #tpu.memory_space<vmem>>, %arg3: memref<128x128xbf16, #tpu.memory_space<vmem>>, %arg4: memref<128x128xbf16, #tpu.memory_space<vmem>>, %arg5: memref<128x128xbf16, #tpu.memory_space<vmem>>, %arg6: memref<1x128xf32, #tpu.memory_space<vmem>>, %arg7: memref<128x128xbf16, #tpu.memory_space<vmem>>, %arg8: memref<1x128xf32, #tpu.memory_space<vmem>>, %arg9: memref<2x128xf32, #tpu.memory_space<vmem>>) attributes {dimension_semantics = [], scalar_prefetch = 0 : i64, scratch_operands = 0 : i64, tpu.core_type = #tpu.core_type<tc>} {
    %c0 = arith.constant 0 : index
    %c0_0 = arith.constant 0 : index
    %0 = vector.load %arg1[%c0, %c0_0] : memref<8x128xf32, #tpu.memory_space<vmem>>, vector<8x128xf32>
    %c0_1 = arith.constant 0 : index
    %c0_2 = arith.constant 0 : index
    %1 = vector.load %arg2[%c0_1, %c0_2] : memref<1x128xf32, #tpu.memory_space<vmem>>, vector<1x128xf32>
    %2 = vector.shape_cast %1 : vector<1x128xf32> to vector<1x128xf32>
    %3 = vector.broadcast %2 : vector<1x128xf32> to vector<5x128xf32>
    %c0_3 = arith.constant 0 : index
    %c0_4 = arith.constant 0 : index
    %4 = vector.load %arg3[%c0_3, %c0_4] : memref<128x128xbf16, #tpu.memory_space<vmem>>, vector<128x128xbf16>
    %cst = arith.constant 0.000000e+00 : f32
    %5 = vector.broadcast %cst : f32 to vector<5x128xf32>
    %c0_5 = arith.constant 0 : index
    %c0_6 = arith.constant 0 : index
    %c0_7 = arith.constant 0 : index
    %6 = vector.load %arg0[%c0_5, %c0_6, %c0_7] : memref<16x5x8xf32, #tpu.memory_space<vmem>>, vector<1x5x8xf32>
    %7 = vector.shape_cast %6 : vector<1x5x8xf32> to vector<5x8xf32>
    %cst_8 = arith.constant dense<0.000000e+00> : vector<5x128xf32>
    %8 = tpu.matmul %7, %0, %cst_8 {dimension_numbers = #tpu.dot_dimension_numbers<[1], [0], [0], [1], [0, 0, 1, 1], [], []>} : vector<5x8xf32>, vector<8x128xf32>, vector<5x128xf32> -> vector<5x128xf32>
    %9 = arith.addf %8, %3 : vector<5x128xf32>
    %10 = arith.truncf %5 : vector<5x128xf32> to vector<5x128xbf16>
    %cst_9 = arith.constant dense<0.000000e+00> : vector<5x128xf32>
    %11 = tpu.matmul %10, %4, %cst_9 {dimension_numbers = #tpu.dot_dimension_numbers<[1], [0], [0], [1], [0, 0, 1, 1], [], []>} : vector<5x128xbf16>, vector<128x128xbf16>, vector<5x128xf32> -> vector<5x128xf32>
    %12 = arith.addf %9, %11 : vector<5x128xf32>
    %13 = math.tanh %12 : vector<5x128xf32>
    %c1 = arith.constant 1 : index
    %c0_10 = arith.constant 0 : index
    %c0_11 = arith.constant 0 : index
    %14 = vector.load %arg0[%c1, %c0_10, %c0_11] : memref<16x5x8xf32, #tpu.memory_space<vmem>>, vector<1x5x8xf32>
    %15 = vector.shape_cast %14 : vector<1x5x8xf32> to vector<5x8xf32>
    %cst_12 = arith.constant dense<0.000000e+00> : vector<5x128xf32>
    %16 = tpu.matmul %15, %0, %cst_12 {dimension_numbers = #tpu.dot_dimension_numbers<[1], [0], [0], [1], [0, 0, 1, 1], [], []>} : vector<5x8xf32>, vector<8x128xf32>, vector<5x128xf32> -> vector<5x128xf32>
    %17 = arith.addf %16, %3 : vector<5x128xf32>
    %18 = arith.truncf %13 : vector<5x128xf32> to vector<5x128xbf16>
    %cst_13 = arith.constant dense<0.000000e+00> : vector<5x128xf32>
    %19 = tpu.matmul %18, %4, %cst_13 {dimension_numbers = #tpu.dot_dimension_numbers<[1], [0], [0], [1], [0, 0, 1, 1], [], []>} : vector<5x128xbf16>, vector<128x128xbf16>, vector<5x128xf32> -> vector<5x128xf32>
    %20 = arith.addf %17, %19 : vector<5x128xf32>
    %21 = math.tanh %20 : vector<5x128xf32>
    %c2 = arith.constant 2 : index
    %c0_14 = arith.constant 0 : index
    %c0_15 = arith.constant 0 : index
    %22 = vector.load %arg0[%c2, %c0_14, %c0_15] : memref<16x5x8xf32, #tpu.memory_space<vmem>>, vector<1x5x8xf32>
    %23 = vector.shape_cast %22 : vector<1x5x8xf32> to vector<5x8xf32>
    %cst_16 = arith.constant dense<0.000000e+00> : vector<5x128xf32>
    %24 = tpu.matmul %23, %0, %cst_16 {dimension_numbers = #tpu.dot_dimension_numbers<[1], [0], [0], [1], [0, 0, 1, 1], [], []>} : vector<5x8xf32>, vector<8x128xf32>, vector<5x128xf32> -> vector<5x128xf32>
    %25 = arith.addf %24, %3 : vector<5x128xf32>
    %26 = arith.truncf %21 : vector<5x128xf32> to vector<5x128xbf16>
    %cst_17 = arith.constant dense<0.000000e+00> : vector<5x128xf32>
    %27 = tpu.matmul %26, %4, %cst_17 {dimension_numbers = #tpu.dot_dimension_numbers<[1], [0], [0], [1], [0, 0, 1, 1], [], []>} : vector<5x128xbf16>, vector<128x128xbf16>, vector<5x128xf32> -> vector<5x128xf32>
    %28 = arith.addf %25, %27 : vector<5x128xf32>
    %29 = math.tanh %28 : vector<5x128xf32>
    %c3 = arith.constant 3 : index
    %c0_18 = arith.constant 0 : index
    %c0_19 = arith.constant 0 : index
    %30 = vector.load %arg0[%c3, %c0_18, %c0_19] : memref<16x5x8xf32, #tpu.memory_space<vmem>>, vector<1x5x8xf32>
    %31 = vector.shape_cast %30 : vector<1x5x8xf32> to vector<5x8xf32>
    %cst_20 = arith.constant dense<0.000000e+00> : vector<5x128xf32>
    %32 = tpu.matmul %31, %0, %cst_20 {dimension_numbers = #tpu.dot_dimension_numbers<[1], [0], [0], [1], [0, 0, 1, 1], [], []>} : vector<5x8xf32>, vector<8x128xf32>, vector<5x128xf32> -> vector<5x128xf32>
    %33 = arith.addf %32, %3 : vector<5x128xf32>
    %34 = arith.truncf %29 : vector<5x128xf32> to vector<5x128xbf16>
    %cst_21 = arith.constant dense<0.000000e+00> : vector<5x128xf32>
    %35 = tpu.matmul %34, %4, %cst_21 {dimension_numbers = #tpu.dot_dimension_numbers<[1], [0], [0], [1], [0, 0, 1, 1], [], []>} : vector<5x128xbf16>, vector<128x128xbf16>, vector<5x128xf32> -> vector<5x128xf32>
    %36 = arith.addf %33, %35 : vector<5x128xf32>
    %37 = math.tanh %36 : vector<5x128xf32>
    %c4 = arith.constant 4 : index
    %c0_22 = arith.constant 0 : index
    %c0_23 = arith.constant 0 : index
    %38 = vector.load %arg0[%c4, %c0_22, %c0_23] : memref<16x5x8xf32, #tpu.memory_space<vmem>>, vector<1x5x8xf32>
    %39 = vector.shape_cast %38 : vector<1x5x8xf32> to vector<5x8xf32>
    %cst_24 = arith.constant dense<0.000000e+00> : vector<5x128xf32>
    %40 = tpu.matmul %39, %0, %cst_24 {dimension_numbers = #tpu.dot_dimension_numbers<[1], [0], [0], [1], [0, 0, 1, 1], [], []>} : vector<5x8xf32>, vector<8x128xf32>, vector<5x128xf32> -> vector<5x128xf32>
    %41 = arith.addf %40, %3 : vector<5x128xf32>
    %42 = arith.truncf %37 : vector<5x128xf32> to vector<5x128xbf16>
    %cst_25 = arith.constant dense<0.000000e+00> : vector<5x128xf32>
    %43 = tpu.matmul %42, %4, %cst_25 {dimension_numbers = #tpu.dot_dimension_numbers<[1], [0], [0], [1], [0, 0, 1, 1], [], []>} : vector<5x128xbf16>, vector<128x128xbf16>, vector<5x128xf32> -> vector<5x128xf32>
    %44 = arith.addf %41, %43 : vector<5x128xf32>
    %45 = math.tanh %44 : vector<5x128xf32>
    %c5 = arith.constant 5 : index
    %c0_26 = arith.constant 0 : index
    %c0_27 = arith.constant 0 : index
    %46 = vector.load %arg0[%c5, %c0_26, %c0_27] : memref<16x5x8xf32, #tpu.memory_space<vmem>>, vector<1x5x8xf32>
    %47 = vector.shape_cast %46 : vector<1x5x8xf32> to vector<5x8xf32>
    %cst_28 = arith.constant dense<0.000000e+00> : vector<5x128xf32>
    %48 = tpu.matmul %47, %0, %cst_28 {dimension_numbers = #tpu.dot_dimension_numbers<[1], [0], [0], [1], [0, 0, 1, 1], [], []>} : vector<5x8xf32>, vector<8x128xf32>, vector<5x128xf32> -> vector<5x128xf32>
    %49 = arith.addf %48, %3 : vector<5x128xf32>
    %50 = arith.truncf %45 : vector<5x128xf32> to vector<5x128xbf16>
    %cst_29 = arith.constant dense<0.000000e+00> : vector<5x128xf32>
    %51 = tpu.matmul %50, %4, %cst_29 {dimension_numbers = #tpu.dot_dimension_numbers<[1], [0], [0], [1], [0, 0, 1, 1], [], []>} : vector<5x128xbf16>, vector<128x128xbf16>, vector<5x128xf32> -> vector<5x128xf32>
    %52 = arith.addf %49, %51 : vector<5x128xf32>
    %53 = math.tanh %52 : vector<5x128xf32>
    %c6 = arith.constant 6 : index
    %c0_30 = arith.constant 0 : index
    %c0_31 = arith.constant 0 : index
    %54 = vector.load %arg0[%c6, %c0_30, %c0_31] : memref<16x5x8xf32, #tpu.memory_space<vmem>>, vector<1x5x8xf32>
    %55 = vector.shape_cast %54 : vector<1x5x8xf32> to vector<5x8xf32>
    %cst_32 = arith.constant dense<0.000000e+00> : vector<5x128xf32>
    %56 = tpu.matmul %55, %0, %cst_32 {dimension_numbers = #tpu.dot_dimension_numbers<[1], [0], [0], [1], [0, 0, 1, 1], [], []>} : vector<5x8xf32>, vector<8x128xf32>, vector<5x128xf32> -> vector<5x128xf32>
    %57 = arith.addf %56, %3 : vector<5x128xf32>
    %58 = arith.truncf %53 : vector<5x128xf32> to vector<5x128xbf16>
    %cst_33 = arith.constant dense<0.000000e+00> : vector<5x128xf32>
    %59 = tpu.matmul %58, %4, %cst_33 {dimension_numbers = #tpu.dot_dimension_numbers<[1], [0], [0], [1], [0, 0, 1, 1], [], []>} : vector<5x128xbf16>, vector<128x128xbf16>, vector<5x128xf32> -> vector<5x128xf32>
    %60 = arith.addf %57, %59 : vector<5x128xf32>
    %61 = math.tanh %60 : vector<5x128xf32>
    %c7 = arith.constant 7 : index
    %c0_34 = arith.constant 0 : index
    %c0_35 = arith.constant 0 : index
    %62 = vector.load %arg0[%c7, %c0_34, %c0_35] : memref<16x5x8xf32, #tpu.memory_space<vmem>>, vector<1x5x8xf32>
    %63 = vector.shape_cast %62 : vector<1x5x8xf32> to vector<5x8xf32>
    %cst_36 = arith.constant dense<0.000000e+00> : vector<5x128xf32>
    %64 = tpu.matmul %63, %0, %cst_36 {dimension_numbers = #tpu.dot_dimension_numbers<[1], [0], [0], [1], [0, 0, 1, 1], [], []>} : vector<5x8xf32>, vector<8x128xf32>, vector<5x128xf32> -> vector<5x128xf32>
    %65 = arith.addf %64, %3 : vector<5x128xf32>
    %66 = arith.truncf %61 : vector<5x128xf32> to vector<5x128xbf16>
    %cst_37 = arith.constant dense<0.000000e+00> : vector<5x128xf32>
    %67 = tpu.matmul %66, %4, %cst_37 {dimension_numbers = #tpu.dot_dimension_numbers<[1], [0], [0], [1], [0, 0, 1, 1], [], []>} : vector<5x128xbf16>, vector<128x128xbf16>, vector<5x128xf32> -> vector<5x128xf32>
    %68 = arith.addf %65, %67 : vector<5x128xf32>
    %69 = math.tanh %68 : vector<5x128xf32>
    %c8 = arith.constant 8 : index
    %c0_38 = arith.constant 0 : index
    %c0_39 = arith.constant 0 : index
    %70 = vector.load %arg0[%c8, %c0_38, %c0_39] : memref<16x5x8xf32, #tpu.memory_space<vmem>>, vector<1x5x8xf32>
    %71 = vector.shape_cast %70 : vector<1x5x8xf32> to vector<5x8xf32>
    %cst_40 = arith.constant dense<0.000000e+00> : vector<5x128xf32>
    %72 = tpu.matmul %71, %0, %cst_40 {dimension_numbers = #tpu.dot_dimension_numbers<[1], [0], [0], [1], [0, 0, 1, 1], [], []>} : vector<5x8xf32>, vector<8x128xf32>, vector<5x128xf32> -> vector<5x128xf32>
    %73 = arith.addf %72, %3 : vector<5x128xf32>
    %74 = arith.truncf %69 : vector<5x128xf32> to vector<5x128xbf16>
    %cst_41 = arith.constant dense<0.000000e+00> : vector<5x128xf32>
    %75 = tpu.matmul %74, %4, %cst_41 {dimension_numbers = #tpu.dot_dimension_numbers<[1], [0], [0], [1], [0, 0, 1, 1], [], []>} : vector<5x128xbf16>, vector<128x128xbf16>, vector<5x128xf32> -> vector<5x128xf32>
    %76 = arith.addf %73, %75 : vector<5x128xf32>
    %77 = math.tanh %76 : vector<5x128xf32>
    %c9 = arith.constant 9 : index
    %c0_42 = arith.constant 0 : index
    %c0_43 = arith.constant 0 : index
    %78 = vector.load %arg0[%c9, %c0_42, %c0_43] : memref<16x5x8xf32, #tpu.memory_space<vmem>>, vector<1x5x8xf32>
    %79 = vector.shape_cast %78 : vector<1x5x8xf32> to vector<5x8xf32>
    %cst_44 = arith.constant dense<0.000000e+00> : vector<5x128xf32>
    %80 = tpu.matmul %79, %0, %cst_44 {dimension_numbers = #tpu.dot_dimension_numbers<[1], [0], [0], [1], [0, 0, 1, 1], [], []>} : vector<5x8xf32>, vector<8x128xf32>, vector<5x128xf32> -> vector<5x128xf32>
    %81 = arith.addf %80, %3 : vector<5x128xf32>
    %82 = arith.truncf %77 : vector<5x128xf32> to vector<5x128xbf16>
    %cst_45 = arith.constant dense<0.000000e+00> : vector<5x128xf32>
    %83 = tpu.matmul %82, %4, %cst_45 {dimension_numbers = #tpu.dot_dimension_numbers<[1], [0], [0], [1], [0, 0, 1, 1], [], []>} : vector<5x128xbf16>, vector<128x128xbf16>, vector<5x128xf32> -> vector<5x128xf32>
    %84 = arith.addf %81, %83 : vector<5x128xf32>
    %85 = math.tanh %84 : vector<5x128xf32>
    %c10 = arith.constant 10 : index
    %c0_46 = arith.constant 0 : index
    %c0_47 = arith.constant 0 : index
    %86 = vector.load %arg0[%c10, %c0_46, %c0_47] : memref<16x5x8xf32, #tpu.memory_space<vmem>>, vector<1x5x8xf32>
    %87 = vector.shape_cast %86 : vector<1x5x8xf32> to vector<5x8xf32>
    %cst_48 = arith.constant dense<0.000000e+00> : vector<5x128xf32>
    %88 = tpu.matmul %87, %0, %cst_48 {dimension_numbers = #tpu.dot_dimension_numbers<[1], [0], [0], [1], [0, 0, 1, 1], [], []>} : vector<5x8xf32>, vector<8x128xf32>, vector<5x128xf32> -> vector<5x128xf32>
    %89 = arith.addf %88, %3 : vector<5x128xf32>
    %90 = arith.truncf %85 : vector<5x128xf32> to vector<5x128xbf16>
    %cst_49 = arith.constant dense<0.000000e+00> : vector<5x128xf32>
    %91 = tpu.matmul %90, %4, %cst_49 {dimension_numbers = #tpu.dot_dimension_numbers<[1], [0], [0], [1], [0, 0, 1, 1], [], []>} : vector<5x128xbf16>, vector<128x128xbf16>, vector<5x128xf32> -> vector<5x128xf32>
    %92 = arith.addf %89, %91 : vector<5x128xf32>
    %93 = math.tanh %92 : vector<5x128xf32>
    %c11 = arith.constant 11 : index
    %c0_50 = arith.constant 0 : index
    %c0_51 = arith.constant 0 : index
    %94 = vector.load %arg0[%c11, %c0_50, %c0_51] : memref<16x5x8xf32, #tpu.memory_space<vmem>>, vector<1x5x8xf32>
    %95 = vector.shape_cast %94 : vector<1x5x8xf32> to vector<5x8xf32>
    %cst_52 = arith.constant dense<0.000000e+00> : vector<5x128xf32>
    %96 = tpu.matmul %95, %0, %cst_52 {dimension_numbers = #tpu.dot_dimension_numbers<[1], [0], [0], [1], [0, 0, 1, 1], [], []>} : vector<5x8xf32>, vector<8x128xf32>, vector<5x128xf32> -> vector<5x128xf32>
    %97 = arith.addf %96, %3 : vector<5x128xf32>
    %98 = arith.truncf %93 : vector<5x128xf32> to vector<5x128xbf16>
    %cst_53 = arith.constant dense<0.000000e+00> : vector<5x128xf32>
    %99 = tpu.matmul %98, %4, %cst_53 {dimension_numbers = #tpu.dot_dimension_numbers<[1], [0], [0], [1], [0, 0, 1, 1], [], []>} : vector<5x128xbf16>, vector<128x128xbf16>, vector<5x128xf32> -> vector<5x128xf32>
    %100 = arith.addf %97, %99 : vector<5x128xf32>
    %101 = math.tanh %100 : vector<5x128xf32>
    %c12 = arith.constant 12 : index
    %c0_54 = arith.constant 0 : index
    %c0_55 = arith.constant 0 : index
    %102 = vector.load %arg0[%c12, %c0_54, %c0_55] : memref<16x5x8xf32, #tpu.memory_space<vmem>>, vector<1x5x8xf32>
    %103 = vector.shape_cast %102 : vector<1x5x8xf32> to vector<5x8xf32>
    %cst_56 = arith.constant dense<0.000000e+00> : vector<5x128xf32>
    %104 = tpu.matmul %103, %0, %cst_56 {dimension_numbers = #tpu.dot_dimension_numbers<[1], [0], [0], [1], [0, 0, 1, 1], [], []>} : vector<5x8xf32>, vector<8x128xf32>, vector<5x128xf32> -> vector<5x128xf32>
    %105 = arith.addf %104, %3 : vector<5x128xf32>
    %106 = arith.truncf %101 : vector<5x128xf32> to vector<5x128xbf16>
    %cst_57 = arith.constant dense<0.000000e+00> : vector<5x128xf32>
    %107 = tpu.matmul %106, %4, %cst_57 {dimension_numbers = #tpu.dot_dimension_numbers<[1], [0], [0], [1], [0, 0, 1, 1], [], []>} : vector<5x128xbf16>, vector<128x128xbf16>, vector<5x128xf32> -> vector<5x128xf32>
    %108 = arith.addf %105, %107 : vector<5x128xf32>
    %109 = math.tanh %108 : vector<5x128xf32>
    %c13 = arith.constant 13 : index
    %c0_58 = arith.constant 0 : index
    %c0_59 = arith.constant 0 : index
    %110 = vector.load %arg0[%c13, %c0_58, %c0_59] : memref<16x5x8xf32, #tpu.memory_space<vmem>>, vector<1x5x8xf32>
    %111 = vector.shape_cast %110 : vector<1x5x8xf32> to vector<5x8xf32>
    %cst_60 = arith.constant dense<0.000000e+00> : vector<5x128xf32>
    %112 = tpu.matmul %111, %0, %cst_60 {dimension_numbers = #tpu.dot_dimension_numbers<[1], [0], [0], [1], [0, 0, 1, 1], [], []>} : vector<5x8xf32>, vector<8x128xf32>, vector<5x128xf32> -> vector<5x128xf32>
    %113 = arith.addf %112, %3 : vector<5x128xf32>
    %114 = arith.truncf %109 : vector<5x128xf32> to vector<5x128xbf16>
    %cst_61 = arith.constant dense<0.000000e+00> : vector<5x128xf32>
    %115 = tpu.matmul %114, %4, %cst_61 {dimension_numbers = #tpu.dot_dimension_numbers<[1], [0], [0], [1], [0, 0, 1, 1], [], []>} : vector<5x128xbf16>, vector<128x128xbf16>, vector<5x128xf32> -> vector<5x128xf32>
    %116 = arith.addf %113, %115 : vector<5x128xf32>
    %117 = math.tanh %116 : vector<5x128xf32>
    %c14 = arith.constant 14 : index
    %c0_62 = arith.constant 0 : index
    %c0_63 = arith.constant 0 : index
    %118 = vector.load %arg0[%c14, %c0_62, %c0_63] : memref<16x5x8xf32, #tpu.memory_space<vmem>>, vector<1x5x8xf32>
    %119 = vector.shape_cast %118 : vector<1x5x8xf32> to vector<5x8xf32>
    %cst_64 = arith.constant dense<0.000000e+00> : vector<5x128xf32>
    %120 = tpu.matmul %119, %0, %cst_64 {dimension_numbers = #tpu.dot_dimension_numbers<[1], [0], [0], [1], [0, 0, 1, 1], [], []>} : vector<5x8xf32>, vector<8x128xf32>, vector<5x128xf32> -> vector<5x128xf32>
    %121 = arith.addf %120, %3 : vector<5x128xf32>
    %122 = arith.truncf %117 : vector<5x128xf32> to vector<5x128xbf16>
    %cst_65 = arith.constant dense<0.000000e+00> : vector<5x128xf32>
    %123 = tpu.matmul %122, %4, %cst_65 {dimension_numbers = #tpu.dot_dimension_numbers<[1], [0], [0], [1], [0, 0, 1, 1], [], []>} : vector<5x128xbf16>, vector<128x128xbf16>, vector<5x128xf32> -> vector<5x128xf32>
    %124 = arith.addf %121, %123 : vector<5x128xf32>
    %125 = math.tanh %124 : vector<5x128xf32>
    %c15 = arith.constant 15 : index
    %c0_66 = arith.constant 0 : index
    %c0_67 = arith.constant 0 : index
    %126 = vector.load %arg0[%c15, %c0_66, %c0_67] : memref<16x5x8xf32, #tpu.memory_space<vmem>>, vector<1x5x8xf32>
    %127 = vector.shape_cast %126 : vector<1x5x8xf32> to vector<5x8xf32>
    %cst_68 = arith.constant dense<0.000000e+00> : vector<5x128xf32>
    %128 = tpu.matmul %127, %0, %cst_68 {dimension_numbers = #tpu.dot_dimension_numbers<[1], [0], [0], [1], [0, 0, 1, 1], [], []>} : vector<5x8xf32>, vector<8x128xf32>, vector<5x128xf32> -> vector<5x128xf32>
    %129 = arith.addf %128, %3 : vector<5x128xf32>
    %130 = arith.truncf %125 : vector<5x128xf32> to vector<5x128xbf16>
    %cst_69 = arith.constant dense<0.000000e+00> : vector<5x128xf32>
    %131 = tpu.matmul %130, %4, %cst_69 {dimension_numbers = #tpu.dot_dimension_numbers<[1], [0], [0], [1], [0, 0, 1, 1], [], []>} : vector<5x128xbf16>, vector<128x128xbf16>, vector<5x128xf32> -> vector<5x128xf32>
    %132 = arith.addf %129, %131 : vector<5x128xf32>
    %133 = math.tanh %132 : vector<5x128xf32>
    %c0_70 = arith.constant 0 : index
    %c0_71 = arith.constant 0 : index
    %134 = vector.load %arg4[%c0_70, %c0_71] : memref<128x128xbf16, #tpu.memory_space<vmem>>, vector<128x128xbf16>
    %c0_72 = arith.constant 0 : index
    %c0_73 = arith.constant 0 : index
    %135 = vector.load %arg6[%c0_72, %c0_73] : memref<1x128xf32, #tpu.memory_space<vmem>>, vector<1x128xf32>
    %136 = vector.shape_cast %135 : vector<1x128xf32> to vector<1x128xf32>
    %137 = vector.broadcast %136 : vector<1x128xf32> to vector<5x128xf32>
    %138 = arith.truncf %69 : vector<5x128xf32> to vector<5x128xbf16>
    %cst_74 = arith.constant dense<0.000000e+00> : vector<5x128xf32>
    %139 = tpu.matmul %138, %134, %cst_74 {dimension_numbers = #tpu.dot_dimension_numbers<[1], [0], [0], [1], [0, 0, 1, 1], [], []>} : vector<5x128xbf16>, vector<128x128xbf16>, vector<5x128xf32> -> vector<5x128xf32>
    %140 = arith.addf %139, %137 : vector<5x128xf32>
    %141 = arith.truncf %133 : vector<5x128xf32> to vector<5x128xbf16>
    %cst_75 = arith.constant dense<0.000000e+00> : vector<5x128xf32>
    %142 = tpu.matmul %141, %134, %cst_75 {dimension_numbers = #tpu.dot_dimension_numbers<[1], [0], [0], [1], [0, 0, 1, 1], [], []>} : vector<5x128xbf16>, vector<128x128xbf16>, vector<5x128xf32> -> vector<5x128xf32>
    %143 = arith.addf %142, %137 : vector<5x128xf32>
    %144 = vector.shape_cast %140 : vector<5x128xf32> to vector<1x5x128xf32>
    %145 = vector.shape_cast %143 : vector<5x128xf32> to vector<1x5x128xf32>
    %146 = tpu.concatenate %144, %145 in 0 : vector<1x5x128xf32>, vector<1x5x128xf32> -> vector<2x5x128xf32>
    %c0_76 = arith.constant 0 : index
    %c0_77 = arith.constant 0 : index
    %147 = vector.load %arg5[%c0_76, %c0_77] : memref<128x128xbf16, #tpu.memory_space<vmem>>, vector<128x128xbf16>
    %cst_78 = arith.constant 0.000000e+00 : f32
    %148 = vector.broadcast %cst_78 : f32 to vector<2x128xf32>
    %149 = vector.extract_strided_slice %146 {offsets = [0, 0, 0], sizes = [2, 1, 128], strides = [1, 1, 1]} : vector<2x5x128xf32> to vector<2x1x128xf32>
    %150 = vector.shape_cast %149 : vector<2x1x128xf32> to vector<2x128xf32>
    %151 = arith.truncf %148 : vector<2x128xf32> to vector<2x128xbf16>
    %cst_79 = arith.constant dense<0.000000e+00> : vector<2x128xf32>
    %152 = tpu.matmul %151, %147, %cst_79 {dimension_numbers = #tpu.dot_dimension_numbers<[1], [0], [0], [1], [0, 0, 1, 1], [], []>} : vector<2x128xbf16>, vector<128x128xbf16>, vector<2x128xf32> -> vector<2x128xf32>
    %153 = arith.addf %150, %152 : vector<2x128xf32>
    %154 = math.tanh %153 : vector<2x128xf32>
    %155 = vector.extract_strided_slice %146 {offsets = [0, 1, 0], sizes = [2, 1, 128], strides = [1, 1, 1]} : vector<2x5x128xf32> to vector<2x1x128xf32>
    %156 = vector.shape_cast %155 : vector<2x1x128xf32> to vector<2x128xf32>
    %157 = arith.truncf %154 : vector<2x128xf32> to vector<2x128xbf16>
    %cst_80 = arith.constant dense<0.000000e+00> : vector<2x128xf32>
    %158 = tpu.matmul %157, %147, %cst_80 {dimension_numbers = #tpu.dot_dimension_numbers<[1], [0], [0], [1], [0, 0, 1, 1], [], []>} : vector<2x128xbf16>, vector<128x128xbf16>, vector<2x128xf32> -> vector<2x128xf32>
    %159 = arith.addf %156, %158 : vector<2x128xf32>
    %160 = math.tanh %159 : vector<2x128xf32>
    %161 = vector.extract_strided_slice %146 {offsets = [0, 2, 0], sizes = [2, 1, 128], strides = [1, 1, 1]} : vector<2x5x128xf32> to vector<2x1x128xf32>
    %162 = vector.shape_cast %161 : vector<2x1x128xf32> to vector<2x128xf32>
    %163 = arith.truncf %160 : vector<2x128xf32> to vector<2x128xbf16>
    %cst_81 = arith.constant dense<0.000000e+00> : vector<2x128xf32>
    %164 = tpu.matmul %163, %147, %cst_81 {dimension_numbers = #tpu.dot_dimension_numbers<[1], [0], [0], [1], [0, 0, 1, 1], [], []>} : vector<2x128xbf16>, vector<128x128xbf16>, vector<2x128xf32> -> vector<2x128xf32>
    %165 = arith.addf %162, %164 : vector<2x128xf32>
    %166 = math.tanh %165 : vector<2x128xf32>
    %167 = vector.extract_strided_slice %146 {offsets = [0, 3, 0], sizes = [2, 1, 128], strides = [1, 1, 1]} : vector<2x5x128xf32> to vector<2x1x128xf32>
    %168 = vector.shape_cast %167 : vector<2x1x128xf32> to vector<2x128xf32>
    %169 = arith.truncf %166 : vector<2x128xf32> to vector<2x128xbf16>
    %cst_82 = arith.constant dense<0.000000e+00> : vector<2x128xf32>
    %170 = tpu.matmul %169, %147, %cst_82 {dimension_numbers = #tpu.dot_dimension_numbers<[1], [0], [0], [1], [0, 0, 1, 1], [], []>} : vector<2x128xbf16>, vector<128x128xbf16>, vector<2x128xf32> -> vector<2x128xf32>
    %171 = arith.addf %168, %170 : vector<2x128xf32>
    %172 = math.tanh %171 : vector<2x128xf32>
    %173 = vector.extract_strided_slice %146 {offsets = [0, 4, 0], sizes = [2, 1, 128], strides = [1, 1, 1]} : vector<2x5x128xf32> to vector<2x1x128xf32>
    %174 = vector.shape_cast %173 : vector<2x1x128xf32> to vector<2x128xf32>
    %175 = arith.truncf %172 : vector<2x128xf32> to vector<2x128xbf16>
    %cst_83 = arith.constant dense<0.000000e+00> : vector<2x128xf32>
    %176 = tpu.matmul %175, %147, %cst_83 {dimension_numbers = #tpu.dot_dimension_numbers<[1], [0], [0], [1], [0, 0, 1, 1], [], []>} : vector<2x128xbf16>, vector<128x128xbf16>, vector<2x128xf32> -> vector<2x128xf32>
    %177 = arith.addf %174, %176 : vector<2x128xf32>
    %178 = math.tanh %177 : vector<2x128xf32>
    %179 = arith.truncf %178 : vector<2x128xf32> to vector<2x128xbf16>
    %c0_84 = arith.constant 0 : index
    %c0_85 = arith.constant 0 : index
    %180 = vector.load %arg7[%c0_84, %c0_85] : memref<128x128xbf16, #tpu.memory_space<vmem>>, vector<128x128xbf16>
    %cst_86 = arith.constant dense<0.000000e+00> : vector<2x128xf32>
    %181 = tpu.matmul %179, %180, %cst_86 {dimension_numbers = #tpu.dot_dimension_numbers<[1], [0], [0], [1], [0, 0, 1, 1], [], []>} : vector<2x128xbf16>, vector<128x128xbf16>, vector<2x128xf32> -> vector<2x128xf32>
    %c0_87 = arith.constant 0 : index
    %c0_88 = arith.constant 0 : index
    %182 = vector.load %arg8[%c0_87, %c0_88] : memref<1x128xf32, #tpu.memory_space<vmem>>, vector<1x128xf32>
    %183 = vector.broadcast %182 : vector<1x128xf32> to vector<2x128xf32>
    %184 = arith.addf %181, %183 : vector<2x128xf32>
    %c0_89 = arith.constant 0 : index
    %c0_90 = arith.constant 0 : index
    %185 = vector.load %arg9[%c0_89, %c0_90] : memref<2x128xf32, #tpu.memory_space<vmem>>, vector<2x128xf32>
    tpu.vector_store %arg9[%c0_89, %c0_90], %184 {strides = array<i32>} : memref<2x128xf32, #tpu.memory_space<vmem>>, vector<2x128xf32>,
    return
  }
}

</mosaic_0001>

<bundles_post_ra>
// kernel: tpu_custom_call.1
= control target key start
LH: loop header
LB: loop body
LE: loop exit
PB: predicated region body
PF: predicated region fallthrough
CT: control target
= control target key end

     0   :  { %14 = vsyncpa [#allocation3], 0  ;;  %s4541_s0 = inlined_call_operand.vmem [shape: f32[16,5,8], index: 0, kind: input, shape index: {}]   ;;  %s4542_s1 = inlined_call_operand.hbm [shape: f32[8,128], index: 1, kind: input, shape index: {}]   ;;  %s4543_s2 = inlined_call_operand.vmem [shape: f32[1,128], index: 2, kind: input, shape index: {}]   ;;  %s4544_s3 = inlined_call_operand.vmem [shape: bf16[128,128], index: 3, kind: input, shape index: {}]   ;;  %s4545_s4 = inlined_call_operand.vmem [shape: bf16[128,128], index: 4, kind: input, shape index: {}]   ;;  %s4546_s5 = inlined_call_operand.hbm [shape: bf16[128,128], index: 5, kind: input, shape index: {}]   ;;  %s4547_s6 = inlined_call_operand.vmem [shape: f32[1,128], index: 6, kind: input, shape index: {}]   ;;  %s4548_s7 = inlined_call_operand.vmem [shape: bf16[128,128], index: 7, kind: input, shape index: {}]   ;;  %s4549_s8 = inlined_call_operand.vmem [shape: f32[1,128], index: 8, kind: input, shape index: {}]   ;;  %s4550_s9 = inlined_call_operand.hbm [shape: f32[2,128], index: 9, kind: output, shape index: {}]  }
   0x1   :  { %15 = vsyncpa [#allocation6], 0 }
   0x2   :  { %16 = vsyncpa [#allocation4], 0  ;;  %s3706_s30 = smov [#allocation2]   ;;  %s3707_s11 = smov [#allocation5]  }
   0x3   :  { %s25_s10 = sshll.u32 %s3706_s30, 4  ;;  %s40_s12 = sshll.u32 %s3707_s11, 4  ;;  %s26_s10 = int_to_ptr.vmem [resolvable:$true] %s25_s10  ;;  %s3764_s12 = int_to_ptr.vmem [resolvable:$true] %s40_s12 }
   0x4   :  { %s3634_s15 = scalar_lea.hbm %s4542_s1, 128 }
   0x5   :  { %p3635_p0 = scmp.ne.s32.totalorder %s4542_s1, %s3634_s15  ;;  %p3638_p1 = scmp.lt.u32.totalorder %s3634_s15, %s4542_s1 }
   0x7   :  { %p3640_p2 = pnand %p3638_p1, %p3635_p0 }
   0x9   :  { %3643 = shalt.err (!%p3640_p2)
}
   0xa   :  { %s3644_s20 = scalar_lea.vmem %s26_s10, 128  ;;  %p3649_p4 = scmp.lt.s32.totalorder %s26_s10, %s26_s10 }
   0xb   :  { %p3645_p3 = scmp.ne.s32.totalorder %s26_s10, %s3644_s20  ;;  %p3650_p5 = scmp.lt.s32.totalorder %s3644_s20, %s3644_s20 }
   0xd   :  { %p3651_p6 = por %p3650_p5, %p3649_p4 }
   0xf   :  { %p3652_p7 = pnand %p3651_p6, %p3645_p3 }
  0x11   :  { %3655 = shalt.err (!%p3652_p7)
}
  0x12   :  { %28 = dma.hbm_to_vmem [thread:$0]  %s4542_s1, 128, %s26_s10, [#allocation3]  }
  0x13   :  { %s3656_s25 = scalar_lea.hbm %s4546_s5, 1024 }
  0x14   :  { %p3657_p8 = scmp.ne.s32.totalorder %s4546_s5, %s3656_s25  ;;  %p3660_p9 = scmp.lt.u32.totalorder %s3656_s25, %s4546_s5 }
  0x16   :  { %p3662_p10 = pnand %p3660_p9, %p3657_p8 }
  0x18   :  { %3665 = shalt.err (!%p3662_p10)
}
  0x19   :  { %s3666_s30 = scalar_lea.vmem %s3764_s12, 1024  ;;  %p3671_p12 = scmp.lt.s32.totalorder %s3764_s12, %s3764_s12 }
  0x1a   :  { %p3667_p11 = scmp.ne.s32.totalorder %s3764_s12, %s3666_s30  ;;  %p3672_p13 = scmp.lt.s32.totalorder %s3666_s30, %s3666_s30 }
  0x1c   :  { %p3673_p0 = por %p3672_p13, %p3671_p12 }
  0x1e   :  { %p3674_p1 = pnand %p3673_p0, %p3667_p11 }
  0x20   :  { %3677 = shalt.err (!%p3674_p1)
}
  0x21   :  { %s3708_s1 = smov 64   ;;  %s3709_s10 = smov 4  }
  0x22   :  { %46 = dma.hbm_to_vmem [thread:$0]  %s4546_s5, 1024, %s3764_s12, [#allocation6], %s3708_s1, %s3708_s1, %s3709_s10  }
  0x23   :  { %3700 = dma.done.wait [#allocation3], 128  }
  0x24   :  { %3701 = vsyncadd [#allocation3], 4294967168 }
  0x25   :  { %3702 = dma.done.wait [#allocation6], 1024  }
  0x26   :  { %3703 = vsyncadd [#allocation6], 4294966272  ;;  %v3710_v0 = vmov 0.0   ;;  %vm3711_vm0 = vmmov 0   ;;  %v3804_v1 = vld [vmem:[%s4544_s3] sm:$0xff]   ;;  %v3810_v2 = vld [vmem:[%s4544_s3 + $0x8] sm:$0xff]  }
  0x27   :  { %2979 = vmatprep.subr.bf16.mxu1 %v3710_v0  ;;  %2974 = vmatprep.subr.mxu0 %v3710_v0  ;;  %v3817_v3 = vld [vmem:[%s4544_s3 + $0x10] sm:$0xff]   ;;  %vm85_vm1 = vcmask 64512   ;;  %v3820_v4 = vld [vmem:[#allocation2] sm:$0xff]  ;;  %v3828_v6 = vld [vmem:[%s4544_s3 + $0x18] sm:$0xff]   ;;  %v3712_v12 = vmov 0   ;;  %vm2290_vm2 = vcmask 1041409  }
  0x28   :  { %2976 = vmatprep.mubr.msk.f32.mxu0 %vm3711_vm0, %v3710_v0  ;;  %2995 = vmatprep.mubr.msk.bf16.mxu1 %vm3711_vm0, %v3710_v0  ;;  %v84_v5 = vld [vmem:[%s4541_s0] sm:$0x1f]  ;;  %v2670_v7 = vld [vmem:[%s4541_s0 + $0x8] sm:$0x1f]  ;;  %v3866_v10 = vld [vmem:[%s4544_s3 + $0x30] sm:$0xff]   ;;  %s3713_s14 = smov [#allocation7]  }
  0x29   :  { %2980 = vmatpush3.bf16.msra.mxu1 %v3804_v1  ;;  %2975 = vmatpush3.msra.mxu0 %v3820_v4  ;;  %v3844_v8 = vld [vmem:[%s4544_s3 + $0x20] sm:$0xff]   ;;  %v3855_v9 = vld [vmem:[%s4544_s3 + $0x28] sm:$0xff]   ;;  %v3876_v11 = vld [vmem:[%s4544_s3 + $0x38] sm:$0xff]   ;;  %s2650_s15 = sshll.u32 %s3713_s14, 4  ;;  %s2651_s15 = int_to_ptr.vmem [resolvable:$true] %s2650_s15 }
  0x2a   :  { %2981 = vmatprep.subr.bf16.mxu1 %v3710_v0  ;;  %2977 = vmatmul.mubr.msk.f32.vlgmr.msra.gmra.mrb[0].mxu0 %vm85_vm1, %v84_v5  ;;  %v3899_v17 = vld [vmem:[%s4543_s2] ss:$0 sm:$0xff]  ;;  %v2672_v26 = vld [vmem:[%s4541_s0 + $0x10] sm:$0x1f]  ;;  %v2674_v37 = vld [vmem:[%s4541_s0 + $0x18] sm:$0x1f]  ;;  %p3683_p3 = scmp.lt.s32.totalorder %s2651_s15, %s2651_s15 }
  0x2b   :  { %2999 = vmatprep.subr.mxu0 %v3710_v0  ;;  %3001 = vmatprep.mubr.msk.f32.mxu0 %vm3711_vm0, %v3710_v0  ;;  %v2676_v48 = vld [vmem:[%s4541_s0 + $0x20] sm:$0x1f]  ;;  %v2678_v49 = vld [vmem:[%s4541_s0 + $0x28] sm:$0x1f]  ;;  %s3678_s5 = scalar_lea.vmem %s2651_s15, 32 }
  0x2c   :  { %3000 = vmatpush3.msra.mxu0 %v3820_v4  ;;  %p3679_p2 = scmp.ne.s32.totalorder %s2651_s15, %s3678_s5  ;;  %p3684_p4 = scmp.lt.s32.totalorder %s3678_s5, %s3678_s5 }
  0x2d   :  { %2982 = vmatpush3.bf16.msra.mxu1 %v3810_v2  ;;  %3004 = vmatprep.subr.bf16.mxu0 %v3710_v0 }
  0x2e   :  { %2983 = vmatprep.subr.bf16.mxu1 %v3710_v0  ;;  %3002 = vmatmul.mubr.msk.f32.vlgmr.msra.gmra.mrb[2].mxu0 %vm85_vm1, %v2670_v7  ;;  %p3685_p5 = por %p3684_p4, %p3683_p3 }
  0x2f   :  { %3005 = vmatpush3.bf16.msra.mxu0 %v3804_v1  ;;  %3020 = vmatprep.mubr.msk.bf16.mxu0 %vm3711_vm0, %v3710_v0 }
  0x30   :  { %3006 = vmatprep.subr.bf16.mxu0 %v3710_v0  ;;  %p3686_p6 = pnand %p3685_p5, %p3679_p2 }
  0x31   :  { %2984 = vmatpush3.bf16.msra.mxu1 %v3817_v3 }
  0x32   :  { %2985 = vmatprep.subr.bf16.mxu1 %v3710_v0 }
  0x33   :  { %3007 = vmatpush3.bf16.msra.mxu0 %v3810_v2 }
  0x34   :  { %3008 = vmatprep.subr.bf16.mxu0 %v3710_v0 }
  0x35   :  { %2986 = vmatpush3.bf16.msra.mxu1 %v3828_v6 }
  0x36   :  { %2987 = vmatprep.subr.bf16.mxu1 %v3710_v0 }
  0x37   :  { %3009 = vmatpush3.bf16.msra.mxu0 %v3817_v3 }
  0x38   :  { %3010 = vmatprep.subr.bf16.mxu0 %v3710_v0 }
  0x39   :  { %2988 = vmatpush3.bf16.msra.mxu1 %v3844_v8 }
  0x3a   :  { %2989 = vmatprep.subr.bf16.mxu1 %v3710_v0 }
  0x3b   :  { %3011 = vmatpush3.bf16.msra.mxu0 %v3828_v6 }
  0x3c   :  { %3012 = vmatprep.subr.bf16.mxu0 %v3710_v0 }
  0x3d   :  { %2990 = vmatpush3.bf16.msra.mxu1 %v3855_v9 }
  0x3e   :  { %2991 = vmatprep.subr.bf16.mxu1 %v3710_v0 }
  0x3f   :  { %3013 = vmatpush3.bf16.msra.mxu0 %v3844_v8 }
  0x40   :  { %3014 = vmatprep.subr.bf16.mxu0 %v3710_v0 }
  0x41   :  { %2992 = vmatpush3.bf16.msra.mxu1 %v3866_v10 }
  0x42   :  { %2993 = vmatprep.subr.bf16.mxu1 %v3710_v0 }
  0x43   :  { %3015 = vmatpush3.bf16.msra.mxu0 %v3855_v9 }
  0x44   :  { %3016 = vmatprep.subr.bf16.mxu0 %v3710_v0 }
  0x45   :  { %2994 = vmatpush3.bf16.msra.mxu1 %v3876_v11 }
  0x46   :  { %3024 = vmatprep.subr.mxu1 %v3710_v0 }
  0x47   :  { %3017 = vmatpush3.bf16.msra.mxu0 %v3866_v10 }
  0x48   :  { %2996 = vmatmul.mubr.bf16.vlgmr.msra.gmra.mrb[0].mxu1 %v3712_v12  ;;  %3018 = vmatprep.subr.bf16.mxu0 %v3710_v0 }
  0x49   :  { %3025 = vmatpush3.msra.mxu1 %v3820_v4  ;;  %3026 = vmatprep.mubr.msk.f32.mxu1 %vm3711_vm0, %v3710_v0 }
  0x4a   :  { %3054 = vmatprep.subr.bf16.mxu1 %v3710_v0 }
  0x4b   :  { %3019 = vmatpush3.bf16.msra.mxu0 %v3876_v11 }
  0x4c   :  { %3029 = vmatprep.subr.bf16.mxu0 %v3710_v0 }
  0x50   :  { %3027 = vmatmul.mubr.msk.f32.vlgmr.msra.gmra.mrb[4].mxu1 %vm85_vm1, %v2672_v26 }
  0x51   :  { %3055 = vmatpush3.bf16.msra.mxu1 %v3804_v1  ;;  %3070 = vmatprep.mubr.msk.bf16.mxu1 %vm3711_vm0, %v3710_v0 }
  0x52   :  { %3056 = vmatprep.subr.bf16.mxu1 %v3710_v0 }
  0x55   :  { %3057 = vmatpush3.bf16.msra.mxu1 %v3810_v2 }
  0x56   :  { %3058 = vmatprep.subr.bf16.mxu1 %v3710_v0 }
  0x59   :  { %3059 = vmatpush3.bf16.msra.mxu1 %v3817_v3 }
  0x5a   :  { %3060 = vmatprep.subr.bf16.mxu1 %v3710_v0 }
  0x5d   :  { %3061 = vmatpush3.bf16.msra.mxu1 %v3828_v6 }
  0x5e   :  { %3062 = vmatprep.subr.bf16.mxu1 %v3710_v0 }
  0x61   :  { %3063 = vmatpush3.bf16.msra.mxu1 %v3844_v8 }
  0x62   :  { %3064 = vmatprep.subr.bf16.mxu1 %v3710_v0 }
  0x65   :  { %3065 = vmatpush3.bf16.msra.mxu1 %v3855_v9 }
  0x66   :  { %3066 = vmatprep.subr.bf16.mxu1 %v3710_v0 }
  0x69   :  { %3067 = vmatpush3.bf16.msra.mxu1 %v3866_v10 }
  0x6a   :  { %3068 = vmatprep.subr.bf16.mxu1 %v3710_v0 }
  0x6d   :  { %3069 = vmatpush3.bf16.msra.mxu1 %v3876_v11 }
  0x6e   :  { %3079 = vmatprep.subr.bf16.mxu1 %v3710_v0 }
  0xfd   :  { %v155_v13 = vpop.f32.mrb[0].mxu0 }
  0xfe   :  { %v2978_v14 = vpop.f32.mrb[1].mxu0  ;;  %v156_v18 = vadd.f32 %v3899_v17, %v155_v13 }
 0x101   :  { %v320_v15 = vpop.f32.mrb[2].mxu0 }
 0x102   :  { %v3003_v16 = vpop.f32.mrb[3].mxu0  ;;  %v321_v27 = vadd.f32 %v3899_v17, %v320_v15 }
 0x11b   :  { %v241_v19 = vpop.f32.mrb[0].mxu1 }
 0x11c   :  { %v247_v20 = vadd.f32 %v241_v19, %v156_v18  ;;  %v2997_v21 = vpop.f32.mrb[1].mxu1  ;;  %v2680_v18 = vld [vmem:[%s4541_s0 + $0x30] sm:$0x1f]  ;;  %v2682_v19 = vld [vmem:[%s4541_s0 + $0x38] sm:$0x1f] }
 0x11d   :  { %v244_v22 = vpop.f32.mrb[2].mxu1 }
 0x11e   :  { %3574 = vtanh.f32 %v247_v20  ;;  %v2998_v23 = vpop.f32.mrb[3].mxu1 }
 0x123   :  { %v438_v35 = vpop.f32.mrb[4].mxu1 }
 0x124   :  { %v3028_v36 = vpop.f32.mrb[5].mxu1  ;;  %v439_v38 = vadd.f32 %v3899_v17, %v438_v35 }
 0x128   :  { %v3575_v24 = vpop.eup %3574 }
 0x129   :  { %v324_v25 = vpack.c.bf16 %v3575_v24, %v3575_v24 }
 0x12b   :  { %3021 = vmatmul.mubr.bf16.vlgmr.msra.gmra.mrb[4].mxu0 %v324_v25 }
 0x12c   :  { %3030 = vmatpush3.bf16.msra.mxu0 %v3804_v1  ;;  %3045 = vmatprep.mubr.msk.bf16.mxu0 %vm3711_vm0, %v3710_v0 }
 0x12d   :  { %3031 = vmatprep.subr.bf16.mxu0 %v3710_v0 }
 0x130   :  { %3032 = vmatpush3.bf16.msra.mxu0 %v3810_v2 }
 0x131   :  { %3033 = vmatprep.subr.bf16.mxu0 %v3710_v0 }
 0x134   :  { %3034 = vmatpush3.bf16.msra.mxu0 %v3817_v3 }
 0x135   :  { %3035 = vmatprep.subr.bf16.mxu0 %v3710_v0 }
 0x138   :  { %3036 = vmatpush3.bf16.msra.mxu0 %v3828_v6 }
 0x139   :  { %3037 = vmatprep.subr.bf16.mxu0 %v3710_v0 }
 0x13c   :  { %3038 = vmatpush3.bf16.msra.mxu0 %v3844_v8 }
 0x13d   :  { %3039 = vmatprep.subr.bf16.mxu0 %v3710_v0 }
 0x140   :  { %3040 = vmatpush3.bf16.msra.mxu0 %v3855_v9 }
 0x141   :  { %3041 = vmatprep.subr.bf16.mxu0 %v3710_v0 }
 0x144   :  { %3042 = vmatpush3.bf16.msra.mxu0 %v3866_v10 }
 0x145   :  { %3043 = vmatprep.subr.bf16.mxu0 %v3710_v0 }
 0x148   :  { %3044 = vmatpush3.bf16.msra.mxu0 %v3876_v11 }
 0x149   :  { %3049 = vmatprep.subr.mxu0 %v3710_v0 }
 0x1fe   :  { %v359_v28 = vpop.f32.mrb[4].mxu0 }
 0x1ff   :  { %v365_v29 = vadd.f32 %v359_v28, %v321_v27  ;;  %v3022_v30 = vpop.f32.mrb[5].mxu0 }
 0x200   :  { %v362_v31 = vpop.f32.mrb[6].mxu0 }
 0x201   :  { %3576 = vtanh.f32 %v365_v29  ;;  %v3023_v32 = vpop.f32.mrb[7].mxu0 }
 0x20b   :  { %v3577_v33 = vpop.eup %3576 }
 0x20c   :  { %v442_v34 = vpack.c.bf16 %v3577_v33, %v3577_v33 }
 0x20e   :  { %3046 = vmatmul.mubr.bf16.vlgmr.msra.gmra.mrb[8].mxu0 %v442_v34 }
 0x20f   :  { %3050 = vmatpush3.msra.mxu0 %v3820_v4  ;;  %3051 = vmatprep.mubr.msk.f32.mxu0 %vm3711_vm0, %v3710_v0 }
 0x210   :  { %3074 = vmatprep.subr.mxu0 %v3710_v0 }
 0x216   :  { %3052 = vmatmul.mubr.msk.f32.vlgmr.msra.gmra.mrb[12].mxu0 %vm85_vm1, %v2674_v37 }
 0x217   :  { %3075 = vmatpush3.msra.mxu0 %v3820_v4  ;;  %3076 = vmatprep.mubr.msk.f32.mxu0 %vm3711_vm0, %v3710_v0 }
 0x218   :  { %3099 = vmatprep.subr.mxu0 %v3710_v0 }
 0x21a   :  { %3077 = vmatmul.mubr.msk.f32.vlgmr.msra.gmra.mrb[14].mxu0 %vm85_vm1, %v2676_v48 }
 0x21b   :  { %3100 = vmatpush3.msra.mxu0 %v3820_v4  ;;  %3101 = vmatprep.mubr.msk.f32.mxu0 %vm3711_vm0, %v3710_v0 }
 0x21c   :  { %3104 = vmatprep.subr.bf16.mxu0 %v3710_v0 }
 0x21e   :  { %3102 = vmatmul.mubr.msk.f32.vlgmr.msra.gmra.mrb[16].mxu0 %vm85_vm1, %v2678_v49 }
 0x21f   :  { %3105 = vmatpush3.bf16.msra.mxu0 %v3804_v1  ;;  %3120 = vmatprep.mubr.msk.bf16.mxu0 %vm3711_vm0, %v3710_v0 }
 0x220   :  { %3106 = vmatprep.subr.bf16.mxu0 %v3710_v0 }
 0x223   :  { %3107 = vmatpush3.bf16.msra.mxu0 %v3810_v2 }
 0x224   :  { %3108 = vmatprep.subr.bf16.mxu0 %v3710_v0 }
 0x227   :  { %3109 = vmatpush3.bf16.msra.mxu0 %v3817_v3 }
 0x228   :  { %3110 = vmatprep.subr.bf16.mxu0 %v3710_v0 }
 0x22b   :  { %3111 = vmatpush3.bf16.msra.mxu0 %v3828_v6 }
 0x22c   :  { %3112 = vmatprep.subr.bf16.mxu0 %v3710_v0 }
 0x22f   :  { %3113 = vmatpush3.bf16.msra.mxu0 %v3844_v8 }
 0x230   :  { %3114 = vmatprep.subr.bf16.mxu0 %v3710_v0 }
 0x233   :  { %3115 = vmatpush3.bf16.msra.mxu0 %v3855_v9 }
 0x234   :  { %3116 = vmatprep.subr.bf16.mxu0 %v3710_v0 }
 0x237   :  { %3117 = vmatpush3.bf16.msra.mxu0 %v3866_v10 }
 0x238   :  { %3118 = vmatprep.subr.bf16.mxu0 %v3710_v0 }
 0x23b   :  { %3119 = vmatpush3.bf16.msra.mxu0 %v3876_v11 }
 0x23c   :  { %3129 = vmatprep.subr.bf16.mxu0 %v3710_v0 }
 0x2e1   :  { %v477_v39 = vpop.f32.mrb[8].mxu0 }
 0x2e2   :  { %v483_v40 = vadd.f32 %v477_v39, %v439_v38  ;;  %v3047_v41 = vpop.f32.mrb[9].mxu0 }
 0x2e3   :  { %v480_v42 = vpop.f32.mrb[10].mxu0  ;;  %v2686_v41 = vld [vmem:[%s4541_s0 + $0x48] sm:$0x1f] }
 0x2e4   :  { %3578 = vtanh.f32 %v483_v40  ;;  %v3048_v43 = vpop.f32.mrb[11].mxu0  ;;  %v2684_v40 = vld [vmem:[%s4541_s0 + $0x40] sm:$0x1f] }
 0x2e9   :  { %v556_v46 = vpop.f32.mrb[12].mxu0 }
 0x2ea   :  { %v3053_v47 = vpop.f32.mrb[13].mxu0  ;;  %v557_v50 = vadd.f32 %v3899_v17, %v556_v46 }
 0x2ed   :  { %v674_v58 = vpop.f32.mrb[14].mxu0 }
 0x2ee   :  { %v3579_v44 = vpop.eup %3578  ;;  %v3078_v59 = vpop.f32.mrb[15].mxu0  ;;  %v675_v62 = vadd.f32 %v3899_v17, %v674_v58 }
 0x2ef   :  { %v560_v45 = vpack.c.bf16 %v3579_v44, %v3579_v44 }
 0x2f1   :  { %3071 = vmatmul.mubr.bf16.vlgmr.msra.gmra.mrb[8].mxu1 %v560_v45  ;;  %v792_v60 = vpop.f32.mrb[16].mxu0 }
 0x2f2   :  { %3080 = vmatpush3.bf16.msra.mxu1 %v3804_v1  ;;  %3095 = vmatprep.mubr.msk.bf16.mxu1 %vm3711_vm0, %v3710_v0  ;;  %v3103_v61 = vpop.f32.mrb[17].mxu0  ;;  %v793_v20 = vadd.f32 %v3899_v17, %v792_v60 }
 0x2f3   :  { %3081 = vmatprep.subr.bf16.mxu1 %v3710_v0 }
 0x2f6   :  { %3082 = vmatpush3.bf16.msra.mxu1 %v3810_v2 }
 0x2f7   :  { %3083 = vmatprep.subr.bf16.mxu1 %v3710_v0 }
 0x2fa   :  { %3084 = vmatpush3.bf16.msra.mxu1 %v3817_v3 }
 0x2fb   :  { %3085 = vmatprep.subr.bf16.mxu1 %v3710_v0 }
 0x2fe   :  { %3086 = vmatpush3.bf16.msra.mxu1 %v3828_v6 }
 0x2ff   :  { %3087 = vmatprep.subr.bf16.mxu1 %v3710_v0 }
 0x302   :  { %3088 = vmatpush3.bf16.msra.mxu1 %v3844_v8 }
 0x303   :  { %3089 = vmatprep.subr.bf16.mxu1 %v3710_v0 }
 0x306   :  { %3090 = vmatpush3.bf16.msra.mxu1 %v3855_v9 }
 0x307   :  { %3091 = vmatprep.subr.bf16.mxu1 %v3710_v0 }
 0x30a   :  { %3092 = vmatpush3.bf16.msra.mxu1 %v3866_v10 }
 0x30b   :  { %3093 = vmatprep.subr.bf16.mxu1 %v3710_v0 }
 0x30e   :  { %3094 = vmatpush3.bf16.msra.mxu1 %v3876_v11 }
 0x30f   :  { %3124 = vmatprep.subr.mxu1 %v3710_v0 }
 0x3c4   :  { %v595_v51 = vpop.f32.mrb[8].mxu1 }
 0x3c5   :  { %v601_v52 = vadd.f32 %v595_v51, %v557_v50  ;;  %v3072_v53 = vpop.f32.mrb[9].mxu1 }
 0x3c6   :  { %v598_v54 = vpop.f32.mrb[10].mxu1 }
 0x3c7   :  { %3580 = vtanh.f32 %v601_v52  ;;  %v3073_v55 = vpop.f32.mrb[11].mxu1 }
 0x3d1   :  { %v3581_v56 = vpop.eup %3580 }
 0x3d2   :  { %v678_v57 = vpack.c.bf16 %v3581_v56, %v3581_v56 }
 0x3d4   :  { %3096 = vmatmul.mubr.bf16.vlgmr.msra.gmra.mrb[12].mxu1 %v678_v57 }
 0x3d5   :  { %3125 = vmatpush3.msra.mxu1 %v3820_v4  ;;  %3126 = vmatprep.mubr.msk.f32.mxu1 %vm3711_vm0, %v3710_v0 }
 0x3d6   :  { %3149 = vmatprep.subr.mxu1 %v3710_v0 }
 0x3dc   :  { %3127 = vmatmul.mubr.msk.f32.vlgmr.msra.gmra.mrb[6].mxu1 %vm85_vm1, %v2680_v18 }
 0x3dd   :  { %3150 = vmatpush3.msra.mxu1 %v3820_v4  ;;  %3151 = vmatprep.mubr.msk.f32.mxu1 %vm3711_vm0, %v3710_v0 }
 0x3de   :  { %3154 = vmatprep.subr.bf16.mxu1 %v3710_v0 }
 0x3e0   :  { %3152 = vmatmul.mubr.msk.f32.vlgmr.msra.gmra.mrb[16].mxu1 %vm85_vm1, %v2682_v19 }
 0x3e1   :  { %3155 = vmatpush3.bf16.msra.mxu1 %v3804_v1  ;;  %3170 = vmatprep.mubr.msk.bf16.mxu1 %vm3711_vm0, %v3710_v0 }
 0x3e2   :  { %3156 = vmatprep.subr.bf16.mxu1 %v3710_v0 }
 0x3e5   :  { %3157 = vmatpush3.bf16.msra.mxu1 %v3810_v2 }
 0x3e6   :  { %3158 = vmatprep.subr.bf16.mxu1 %v3710_v0 }
 0x3e9   :  { %3159 = vmatpush3.bf16.msra.mxu1 %v3817_v3 }
 0x3ea   :  { %3160 = vmatprep.subr.bf16.mxu1 %v3710_v0 }
 0x3ed   :  { %3161 = vmatpush3.bf16.msra.mxu1 %v3828_v6 }
 0x3ee   :  { %3162 = vmatprep.subr.bf16.mxu1 %v3710_v0 }
 0x3f1   :  { %3163 = vmatpush3.bf16.msra.mxu1 %v3844_v8 }
 0x3f2   :  { %3164 = vmatprep.subr.bf16.mxu1 %v3710_v0 }
 0x3f5   :  { %3165 = vmatpush3.bf16.msra.mxu1 %v3855_v9 }
 0x3f6   :  { %3166 = vmatprep.subr.bf16.mxu1 %v3710_v0 }
 0x3f9   :  { %3167 = vmatpush3.bf16.msra.mxu1 %v3866_v10 }
 0x3fa   :  { %3168 = vmatprep.subr.bf16.mxu1 %v3710_v0 }
 0x3fd   :  { %3169 = vmatpush3.bf16.msra.mxu1 %v3876_v11 }
 0x3fe   :  { %3179 = vmatprep.subr.bf16.mxu1 %v3710_v0 }
 0x4a7   :  { %v713_v63 = vpop.f32.mrb[12].mxu1 }
 0x4a8   :  { %v719_v5 = vadd.f32 %v713_v63, %v675_v62  ;;  %v3097_v7 = vpop.f32.mrb[13].mxu1  ;;  %v2688_v62 = vld [vmem:[%s4541_s0 + $0x50] sm:$0x1f]  ;;  %v2690_v63 = vld [vmem:[%s4541_s0 + $0x58] sm:$0x1f] }
 0x4a9   :  { %v716_v13 = vpop.f32.mrb[14].mxu1 }
 0x4aa   :  { %3582 = vtanh.f32 %v719_v5  ;;  %v3098_v14 = vpop.f32.mrb[15].mxu1 }
 0x4af   :  { %v910_v28 = vpop.f32.mrb[6].mxu1 }
 0x4b0   :  { %v3128_v29 = vpop.f32.mrb[7].mxu1  ;;  %v911_v32 = vadd.f32 %v3899_v17, %v910_v28 }
 0x4b3   :  { %v1028_v30 = vpop.f32.mrb[16].mxu1 }
 0x4b4   :  { %v3583_v15 = vpop.eup %3582  ;;  %v3153_v31 = vpop.f32.mrb[17].mxu1  ;;  %v1029_v42 = vadd.f32 %v3899_v17, %v1028_v30 }
 0x4b5   :  { %v796_v16 = vpack.c.bf16 %v3583_v15, %v3583_v15 }
 0x4b7   :  { %3121 = vmatmul.mubr.bf16.vlgmr.msra.gmra.mrb[20].mxu0 %v796_v16 }
 0x4b8   :  { %3130 = vmatpush3.bf16.msra.mxu0 %v3804_v1  ;;  %3145 = vmatprep.mubr.msk.bf16.mxu0 %vm3711_vm0, %v3710_v0 }
 0x4b9   :  { %3131 = vmatprep.subr.bf16.mxu0 %v3710_v0 }
 0x4bc   :  { %3132 = vmatpush3.bf16.msra.mxu0 %v3810_v2 }
 0x4bd   :  { %3133 = vmatprep.subr.bf16.mxu0 %v3710_v0 }
 0x4c0   :  { %3134 = vmatpush3.bf16.msra.mxu0 %v3817_v3 }
 0x4c1   :  { %3135 = vmatprep.subr.bf16.mxu0 %v3710_v0 }
 0x4c4   :  { %3136 = vmatpush3.bf16.msra.mxu0 %v3828_v6 }
 0x4c5   :  { %3137 = vmatprep.subr.bf16.mxu0 %v3710_v0 }
 0x4c8   :  { %3138 = vmatpush3.bf16.msra.mxu0 %v3844_v8 }
 0x4c9   :  { %3139 = vmatprep.subr.bf16.mxu0 %v3710_v0 }
 0x4cc   :  { %3140 = vmatpush3.bf16.msra.mxu0 %v3855_v9 }
 0x4cd   :  { %3141 = vmatprep.subr.bf16.mxu0 %v3710_v0 }
 0x4d0   :  { %3142 = vmatpush3.bf16.msra.mxu0 %v3866_v10 }
 0x4d1   :  { %3143 = vmatprep.subr.bf16.mxu0 %v3710_v0 }
 0x4d4   :  { %3144 = vmatpush3.bf16.msra.mxu0 %v3876_v11 }
 0x4d5   :  { %3174 = vmatprep.subr.mxu0 %v3710_v0 }
 0x58a   :  { %v831_v21 = vpop.f32.mrb[20].mxu0 }
 0x58b   :  { %v837_v22 = vadd.f32 %v831_v21, %v793_v20  ;;  %v3122_v23 = vpop.f32.mrb[21].mxu0 }
 0x58c   :  { %v834_v24 = vpop.f32.mrb[22].mxu0 }
 0x58d   :  { %3584 = vtanh.f32 %v837_v22  ;;  %v3123_v25 = vpop.f32.mrb[23].mxu0 }
 0x597   :  { %v3585_v26 = vpop.eup %3584 }
 0x598   :  { %v914_v27 = vpack.c.bf16 %v3585_v26, %v3585_v26 }
 0x59a   :  { %3146 = vmatmul.mubr.bf16.vlgmr.msra.gmra.mrb[24].mxu0 %v914_v27 }
 0x59b   :  { %3175 = vmatpush3.msra.mxu0 %v3820_v4  ;;  %3176 = vmatprep.mubr.msk.f32.mxu0 %vm3711_vm0, %v3710_v0 }
 0x59c   :  { %3199 = vmatprep.subr.mxu0 %v3710_v0 }
 0x5a2   :  { %3177 = vmatmul.mubr.msk.f32.vlgmr.msra.gmra.mrb[18].mxu0 %vm85_vm1, %v2684_v40 }
 0x5a3   :  { %3200 = vmatpush3.msra.mxu0 %v3820_v4  ;;  %3201 = vmatprep.mubr.msk.f32.mxu0 %vm3711_vm0, %v3710_v0 }
 0x5a4   :  { %3204 = vmatprep.subr.bf16.mxu0 %v3710_v0 }
 0x5a6   :  { %3202 = vmatmul.mubr.msk.f32.vlgmr.msra.gmra.mrb[28].mxu0 %vm85_vm1, %v2686_v41 }
 0x5a7   :  { %3205 = vmatpush3.bf16.msra.mxu0 %v3804_v1  ;;  %3220 = vmatprep.mubr.msk.bf16.mxu0 %vm3711_vm0, %v3710_v0 }
 0x5a8   :  { %3206 = vmatprep.subr.bf16.mxu0 %v3710_v0 }
 0x5ab   :  { %3207 = vmatpush3.bf16.msra.mxu0 %v3810_v2 }
 0x5ac   :  { %3208 = vmatprep.subr.bf16.mxu0 %v3710_v0 }
 0x5af   :  { %3209 = vmatpush3.bf16.msra.mxu0 %v3817_v3 }
 0x5b0   :  { %3210 = vmatprep.subr.bf16.mxu0 %v3710_v0 }
 0x5b3   :  { %3211 = vmatpush3.bf16.msra.mxu0 %v3828_v6 }
 0x5b4   :  { %3212 = vmatprep.subr.bf16.mxu0 %v3710_v0 }
 0x5b7   :  { %3213 = vmatpush3.bf16.msra.mxu0 %v3844_v8 }
 0x5b8   :  { %3214 = vmatprep.subr.bf16.mxu0 %v3710_v0 }
 0x5bb   :  { %3215 = vmatpush3.bf16.msra.mxu0 %v3855_v9 }
 0x5bc   :  { %3216 = vmatprep.subr.bf16.mxu0 %v3710_v0 }
 0x5bf   :  { %3217 = vmatpush3.bf16.msra.mxu0 %v3866_v10 }
 0x5c0   :  { %3218 = vmatprep.subr.bf16.mxu0 %v3710_v0 }
 0x5c3   :  { %3219 = vmatpush3.bf16.msra.mxu0 %v3876_v11 }
 0x5c4   :  { %3229 = vmatprep.subr.bf16.mxu0 %v3710_v0 }
 0x66d   :  { %v949_v33 = vpop.f32.mrb[24].mxu0 }
 0x66e   :  { %v955_v34 = vadd.f32 %v949_v33, %v911_v32  ;;  %v3147_v35 = vpop.f32.mrb[25].mxu0  ;;  %v2692_v32 = vld [vmem:[%s4541_s0 + $0x60] sm:$0x1f]  ;;  %v2694_v33 = vld [vmem:[%s4541_s0 + $0x68] sm:$0x1f] }
 0x66f   :  { %v952_v36 = vpop.f32.mrb[26].mxu0 }
 0x670   :  { %3586 = vtanh.f32 %v955_v34  ;;  %v3148_v37 = vpop.f32.mrb[27].mxu0 }
 0x675   :  { %v1146_v50 = vpop.f32.mrb[18].mxu0 }
 0x676   :  { %v3178_v51 = vpop.f32.mrb[19].mxu0  ;;  %v1147_v54 = vadd.f32 %v3899_v17, %v1146_v50 }
 0x677   :  { %v3627_v51 = vld [vmem:[%s4544_s3 + $0x8] sm:$0xff]  }
 0x679   :  { %v1264_v52 = vpop.f32.mrb[28].mxu0 }
 0x67a   :  { %v3587_v38 = vpop.eup %3586  ;;  %v3203_v53 = vpop.f32.mrb[29].mxu0  ;;  %v1265_v5 = vadd.f32 %v3899_v17, %v1264_v52  ;;  %v3628_v52 = vld [vmem:[%s4544_s3 + $0x10] sm:$0xff]  }
 0x67b   :  { %v1032_v39 = vpack.c.bf16 %v3587_v38, %v3587_v38  ;;  %v3629_v53 = vld [vmem:[%s4544_s3 + $0x18] sm:$0xff]  }
 0x67d   :  { %3171 = vmatmul.mubr.bf16.vlgmr.msra.gmra.mrb[20].mxu1 %v1032_v39 }
 0x67e   :  { %3180 = vmatpush3.bf16.msra.mxu1 %v3804_v1  ;;  %3195 = vmatprep.mubr.msk.bf16.mxu1 %vm3711_vm0, %v3710_v0 }
 0x67f   :  { %3181 = vmatprep.subr.bf16.mxu1 %v3710_v0 }
 0x682   :  { %3182 = vmatpush3.bf16.msra.mxu1 %v3810_v2 }
 0x683   :  { %3183 = vmatprep.subr.bf16.mxu1 %v3710_v0 }
 0x686   :  { %3184 = vmatpush3.bf16.msra.mxu1 %v3817_v3 }
 0x687   :  { %3185 = vmatprep.subr.bf16.mxu1 %v3710_v0 }
 0x68a   :  { %3186 = vmatpush3.bf16.msra.mxu1 %v3828_v6 }
 0x68b   :  { %3187 = vmatprep.subr.bf16.mxu1 %v3710_v0 }
 0x68e   :  { %3188 = vmatpush3.bf16.msra.mxu1 %v3844_v8 }
 0x68f   :  { %3189 = vmatprep.subr.bf16.mxu1 %v3710_v0 }
 0x692   :  { %3190 = vmatpush3.bf16.msra.mxu1 %v3855_v9 }
 0x693   :  { %3191 = vmatprep.subr.bf16.mxu1 %v3710_v0 }
 0x696   :  { %3192 = vmatpush3.bf16.msra.mxu1 %v3866_v10 }
 0x697   :  { %3193 = vmatprep.subr.bf16.mxu1 %v3710_v0 }
 0x69a   :  { %3194 = vmatpush3.bf16.msra.mxu1 %v3876_v11 }
 0x69b   :  { %3224 = vmatprep.subr.mxu1 %v3710_v0 }
 0x750   :  { %v1067_v43 = vpop.f32.mrb[20].mxu1 }
 0x751   :  { %v1073_v44 = vadd.f32 %v1067_v43, %v1029_v42  ;;  %v3172_v45 = vpop.f32.mrb[21].mxu1 }
 0x752   :  { %v1070_v46 = vpop.f32.mrb[22].mxu1 }
 0x753   :  { %3588 = vtanh.f32 %v1073_v44  ;;  %v3173_v47 = vpop.f32.mrb[23].mxu1 }
 0x75d   :  { %v3589_v48 = vpop.eup %3588 }
 0x75e   :  { %v4113_v49 = vpack.c.bf16 %v3589_v48, %v3589_v48 }
 0x760   :  { %3196 = vmatmul.mubr.bf16.vlgmr.msra.gmra.mrb[24].mxu1 %v4113_v49 }
 0x761   :  { %3225 = vmatpush3.msra.mxu1 %v3820_v4  ;;  %3226 = vmatprep.mubr.msk.f32.mxu1 %vm3711_vm0, %v3710_v0 }
 0x762   :  { %3249 = vmatprep.subr.mxu1 %v3710_v0 }
 0x768   :  { %3227 = vmatmul.mubr.msk.f32.vlgmr.msra.gmra.mrb[18].mxu1 %vm85_vm1, %v2688_v62 }
 0x769   :  { %3250 = vmatpush3.msra.mxu1 %v3820_v4  ;;  %3251 = vmatprep.mubr.msk.f32.mxu1 %vm3711_vm0, %v3710_v0 }
 0x76a   :  { %3254 = vmatprep.subr.bf16.mxu1 %v3710_v0 }
 0x76c   :  { %3252 = vmatmul.mubr.msk.f32.vlgmr.msra.gmra.mrb[28].mxu1 %vm85_vm1, %v2690_v63 }
 0x76d   :  { %3255 = vmatpush3.bf16.msra.mxu1 %v3804_v1  ;;  %3270 = vmatprep.mubr.msk.bf16.mxu1 %vm3711_vm0, %v3710_v0 }
 0x76e   :  { %3256 = vmatprep.subr.bf16.mxu1 %v3710_v0 }
 0x771   :  { %3257 = vmatpush3.bf16.msra.mxu1 %v3810_v2 }
 0x772   :  { %3258 = vmatprep.subr.bf16.mxu1 %v3710_v0 }
 0x775   :  { %3259 = vmatpush3.bf16.msra.mxu1 %v3817_v3 }
 0x776   :  { %3260 = vmatprep.subr.bf16.mxu1 %v3710_v0 }
 0x779   :  { %3261 = vmatpush3.bf16.msra.mxu1 %v3828_v6 }
 0x77a   :  { %3262 = vmatprep.subr.bf16.mxu1 %v3710_v0 }
 0x77d   :  { %3263 = vmatpush3.bf16.msra.mxu1 %v3844_v8 }
 0x77e   :  { %3264 = vmatprep.subr.bf16.mxu1 %v3710_v0 }
 0x781   :  { %3265 = vmatpush3.bf16.msra.mxu1 %v3855_v9 }
 0x782   :  { %3266 = vmatprep.subr.bf16.mxu1 %v3710_v0 }
 0x785   :  { %3267 = vmatpush3.bf16.msra.mxu1 %v3866_v10 }
 0x786   :  { %3268 = vmatprep.subr.bf16.mxu1 %v3710_v0 }
 0x789   :  { %3269 = vmatpush3.bf16.msra.mxu1 %v3876_v11 }
 0x78a   :  { %3279 = vmatprep.subr.bf16.mxu1 %v3710_v0 }
 0x833   :  { %v1185_v55 = vpop.f32.mrb[24].mxu1 }
 0x834   :  { %v1191_v56 = vadd.f32 %v1185_v55, %v1147_v54  ;;  %v3197_v57 = vpop.f32.mrb[25].mxu1  ;;  %v2696_v54 = vld [vmem:[%s4541_s0 + $0x70] sm:$0x1f]  ;;  %v3631_v55 = vld [vmem:[%s4544_s3 + $0x20] sm:$0xff]  }
 0x835   :  { %v1188_v58 = vpop.f32.mrb[26].mxu1 }
 0x836   :  { %3590 = vtanh.f32 %v1191_v56  ;;  %v3198_v59 = vpop.f32.mrb[27].mxu1  ;;  %v3632_v56 = vld [vmem:[%s4544_s3 + $0x28] sm:$0xff]  }
 0x83b   :  { %v1382_v20 = vpop.f32.mrb[18].mxu1 }
 0x83c   :  { %v3228_v21 = vpop.f32.mrb[19].mxu1  ;;  %v1383_v24 = vadd.f32 %v3899_v17, %v1382_v20  ;;  %v4353_v20 = vld [vmem:[#allocation5 + $0x10] sm:$0xff]  }
 0x83d   :  { %v4357_v21 = vld [vmem:[#allocation5 + $0x18] sm:$0xff]  }
 0x83f   :  { %v1500_v22 = vpop.f32.mrb[28].mxu1 }
 0x840   :  { %v3591_v60 = vpop.eup %3590  ;;  %v3253_v23 = vpop.f32.mrb[29].mxu1 }
 0x841   :  { %v1268_v61 = vpack.c.bf16 %v3591_v60, %v3591_v60  ;;  %v4369_v23 = vld [vmem:[#allocation5 + $0x30] sm:$0xff]  }
 0x843   :  { %3221 = vmatmul.mubr.bf16.vlgmr.msra.gmra.mrb[32].mxu0 %v1268_v61 }
 0x844   :  { %3230 = vmatpush3.bf16.msra.mxu0 %v3804_v1  ;;  %3245 = vmatprep.mubr.msk.bf16.mxu0 %vm3711_vm0, %v3710_v0 }
 0x845   :  { %3231 = vmatprep.subr.bf16.mxu0 %v3710_v0 }
 0x848   :  { %3232 = vmatpush3.bf16.msra.mxu0 %v3810_v2 }
 0x849   :  { %3233 = vmatprep.subr.bf16.mxu0 %v3710_v0 }
 0x84c   :  { %3234 = vmatpush3.bf16.msra.mxu0 %v3817_v3 }
 0x84d   :  { %3235 = vmatprep.subr.bf16.mxu0 %v3710_v0 }
 0x850   :  { %3236 = vmatpush3.bf16.msra.mxu0 %v3828_v6 }
 0x851   :  { %3237 = vmatprep.subr.bf16.mxu0 %v3710_v0 }
 0x854   :  { %3238 = vmatpush3.bf16.msra.mxu0 %v3844_v8 }
 0x855   :  { %3239 = vmatprep.subr.bf16.mxu0 %v3710_v0 }
 0x858   :  { %3240 = vmatpush3.bf16.msra.mxu0 %v3855_v9 }
 0x859   :  { %3241 = vmatprep.subr.bf16.mxu0 %v3710_v0 }
 0x85c   :  { %3242 = vmatpush3.bf16.msra.mxu0 %v3866_v10 }
 0x85d   :  { %3243 = vmatprep.subr.bf16.mxu0 %v3710_v0 }
 0x860   :  { %3244 = vmatpush3.bf16.msra.mxu0 %v3876_v11 }
 0x861   :  { %3274 = vmatprep.subr.mxu0 %v3710_v0 }
 0x916   :  { %v1303_v7 = vpop.f32.mrb[32].mxu0 }
 0x917   :  { %v1309_v13 = vadd.f32 %v1303_v7, %v1265_v5  ;;  %v3222_v14 = vpop.f32.mrb[33].mxu0  ;;  %v4288_v5 = vld [vmem:[%s4545_s4] sm:$0xff]   ;;  %v4310_v7 = vld [vmem:[%s4545_s4 + $0x18] sm:$0xff]  }
 0x918   :  { %v1306_v15 = vpop.f32.mrb[34].mxu0  ;;  %v4324_v14 = vld [vmem:[%s4545_s4 + $0x28] sm:$0xff]  }
 0x919   :  { %3592 = vtanh.f32 %v1309_v13  ;;  %v3223_v16 = vpop.f32.mrb[35].mxu0  ;;  %v4317_v13 = vld [vmem:[%s4545_s4 + $0x20] sm:$0xff]   ;;  %v4331_v15 = vld [vmem:[%s4545_s4 + $0x30] sm:$0xff]  }
 0x91a   :  { %v4338_v16 = vld [vmem:[%s4545_s4 + $0x38] sm:$0xff]  }
 0x923   :  { %v3593_v18 = vpop.eup %3592 }
 0x924   :  { %v1386_v19 = vpack.c.bf16 %v3593_v18, %v3593_v18  ;;  %v4342_v18 = vld [vmem:[#allocation5] sm:$0xff]  }
 0x926   :  { %3246 = vmatmul.mubr.bf16.vlgmr.msra.gmra.mrb[36].mxu0 %v1386_v19  ;;  %v4347_v19 = vld [vmem:[#allocation5 + $0x8] sm:$0xff]  }
 0x927   :  { %3275 = vmatpush3.msra.mxu0 %v3820_v4  ;;  %3276 = vmatprep.mubr.msk.f32.mxu0 %vm3711_vm0, %v3710_v0 }
 0x928   :  { %3299 = vmatprep.subr.mxu0 %v3710_v0 }
 0x92e   :  { %3277 = vmatmul.mubr.msk.f32.vlgmr.msra.gmra.mrb[30].mxu0 %vm85_vm1, %v2692_v32 }
 0x92f   :  { %3300 = vmatpush3.msra.mxu0 %v3820_v4  ;;  %3301 = vmatprep.mubr.msk.f32.mxu0 %vm3711_vm0, %v3710_v0 }
 0x930   :  { %3304 = vmatprep.subr.bf16.mxu0 %v3710_v0 }
 0x932   :  { %3302 = vmatmul.mubr.msk.f32.vlgmr.msra.gmra.mrb[40].mxu0 %vm85_vm1, %v2694_v33 }
 0x933   :  { %3305 = vmatpush3.bf16.msra.mxu0 %v3804_v1  ;;  %3320 = vmatprep.mubr.msk.bf16.mxu0 %vm3711_vm0, %v3710_v0 }
 0x934   :  { %3306 = vmatprep.subr.bf16.mxu0 %v3710_v0 }
 0x937   :  { %3307 = vmatpush3.bf16.msra.mxu0 %v3810_v2 }
 0x938   :  { %3308 = vmatprep.subr.bf16.mxu0 %v3710_v0 }
 0x93b   :  { %3309 = vmatpush3.bf16.msra.mxu0 %v3817_v3 }
 0x93c   :  { %3310 = vmatprep.subr.bf16.mxu0 %v3710_v0 }
 0x93f   :  { %3311 = vmatpush3.bf16.msra.mxu0 %v3828_v6 }
 0x940   :  { %3312 = vmatprep.subr.bf16.mxu0 %v3710_v0 }
 0x943   :  { %3313 = vmatpush3.bf16.msra.mxu0 %v3844_v8 }
 0x944   :  { %3314 = vmatprep.subr.bf16.mxu0 %v3710_v0 }
 0x947   :  { %3315 = vmatpush3.bf16.msra.mxu0 %v3855_v9 }
 0x948   :  { %3316 = vmatprep.subr.bf16.mxu0 %v3710_v0 }
 0x94b   :  { %3317 = vmatpush3.bf16.msra.mxu0 %v3866_v10 }
 0x94c   :  { %3318 = vmatprep.subr.bf16.mxu0 %v3710_v0 }
 0x94f   :  { %3319 = vmatpush3.bf16.msra.mxu0 %v3876_v11 }
 0x950   :  { %3329 = vmatprep.subr.bf16.mxu0 %v3710_v0 }
 0x9f9   :  { %v1421_v25 = vpop.f32.mrb[36].mxu0 }
 0x9fa   :  { %v1427_v26 = vadd.f32 %v1421_v25, %v1383_v24  ;;  %v3247_v27 = vpop.f32.mrb[37].mxu0  ;;  %v4373_v24 = vld [vmem:[#allocation5 + $0x38] sm:$0xff]  }
 0x9fb   :  { %v1424_v28 = vpop.f32.mrb[38].mxu0 }
 0x9fc   :  { %3594 = vtanh.f32 %v1427_v26  ;;  %v3248_v29 = vpop.f32.mrb[39].mxu0  ;;  %v3633_v28 = vld [vmem:[%s4543_s2] ss:$0 sm:$0xff] }
 0xa01   :  { %v1618_v38 = vpop.f32.mrb[30].mxu0 }
 0xa02   :  { %v3278_v39 = vpop.f32.mrb[31].mxu0  ;;  %v1619_v42 = vadd.f32 %v3899_v17, %v1618_v38 }
 0xa05   :  { %v1736_v40 = vpop.f32.mrb[40].mxu0 }
 0xa06   :  { %v3595_v30 = vpop.eup %3594  ;;  %v3303_v41 = vpop.f32.mrb[41].mxu0  ;;  %v1737_v57 = vadd.f32 %v3899_v17, %v1736_v40 }
 0xa07   :  { %v1504_v31 = vpack.c.bf16 %v3595_v30, %v3595_v30 }
 0xa09   :  { %3271 = vmatmul.mubr.bf16.vlgmr.msra.gmra.mrb[32].mxu1 %v1504_v31 }
 0xa0a   :  { %3280 = vmatpush3.bf16.msra.mxu1 %v3804_v1  ;;  %3295 = vmatprep.mubr.msk.bf16.mxu1 %vm3711_vm0, %v3710_v0  ;;  %v1501_v1 = vadd.f32 %v3899_v17, %v1500_v22  ;;  %v4303_v17 = vld [vmem:[%s4545_s4 + $0x10] sm:$0xff]  }
 0xa0b   :  { %3281 = vmatprep.subr.bf16.mxu1 %v3710_v0  ;;  %v4365_v22 = vld [vmem:[#allocation5 + $0x28] sm:$0xff]  }
 0xa0e   :  { %3282 = vmatpush3.bf16.msra.mxu1 %v3810_v2 }
 0xa0f   :  { %3283 = vmatprep.subr.bf16.mxu1 %v3710_v0 }
 0xa12   :  { %3284 = vmatpush3.bf16.msra.mxu1 %v3817_v3 }
 0xa13   :  { %3285 = vmatprep.subr.bf16.mxu1 %v3710_v0 }
 0xa16   :  { %3286 = vmatpush3.bf16.msra.mxu1 %v3828_v6 }
 0xa17   :  { %3287 = vmatprep.subr.bf16.mxu1 %v3710_v0 }
 0xa1a   :  { %3288 = vmatpush3.bf16.msra.mxu1 %v3844_v8 }
 0xa1b   :  { %3289 = vmatprep.subr.bf16.mxu1 %v3710_v0 }
 0xa1e   :  { %3290 = vmatpush3.bf16.msra.mxu1 %v3855_v9 }
 0xa1f   :  { %3291 = vmatprep.subr.bf16.mxu1 %v3710_v0 }
 0xa22   :  { %3292 = vmatpush3.bf16.msra.mxu1 %v3866_v10 }
 0xa23   :  { %3293 = vmatprep.subr.bf16.mxu1 %v3710_v0 }
 0xa26   :  { %3294 = vmatpush3.bf16.msra.mxu1 %v3876_v11 }
 0xa27   :  { %3324 = vmatprep.subr.mxu1 %v3710_v0 }
 0xadc   :  { %v1539_v2 = vpop.f32.mrb[32].mxu1 }
 0xadd   :  { %v1545_v3 = vadd.f32 %v1539_v2, %v1501_v1  ;;  %v3272_v6 = vpop.f32.mrb[33].mxu1 }
 0xade   :  { %v1542_v34 = vpop.f32.mrb[34].mxu1 }
 0xadf   :  { %3596 = vtanh.f32 %v1545_v3  ;;  %v3273_v35 = vpop.f32.mrb[35].mxu1 }
 0xae9   :  { %v3597_v36 = vpop.eup %3596 }
 0xaea   :  { %v1622_v37 = vpack.c.bf16 %v3597_v36, %v3597_v36 }
 0xaec   :  { %3296 = vmatmul.mubr.bf16.vlgmr.msra.gmra.mrb[36].mxu1 %v1622_v37 }
 0xaed   :  { %3325 = vmatpush3.msra.mxu1 %v3820_v4  ;;  %3326 = vmatprep.mubr.msk.f32.mxu1 %vm3711_vm0, %v3710_v0  ;;  %v3626_v4 = vld [vmem:[%s4544_s3] sm:$0xff]  }
 0xaee   :  { %3349 = vmatprep.subr.mxu1 %v3710_v0 }
 0xaf4   :  { %3327 = vmatmul.mubr.msk.f32.vlgmr.msra.gmra.mrb[30].mxu1 %vm85_vm1, %v2696_v54 }
 0xaf5   :  { %3351 = vmatprep.mubr.msk.f32.mxu1 %vm3711_vm0, %v3710_v0 }
 0xbbf   :  { %v1657_v43 = vpop.f32.mrb[36].mxu1 }
 0xbc0   :  { %v1663_v44 = vadd.f32 %v1657_v43, %v1619_v42  ;;  %v3297_v45 = vpop.f32.mrb[37].mxu1 }
 0xbc1   :  { %v1660_v46 = vpop.f32.mrb[38].mxu1 }
 0xbc2   :  { %3598 = vtanh.f32 %v1663_v44  ;;  %v3298_v47 = vpop.f32.mrb[39].mxu1 }
 0xbcc   :  { %v3599_v48 = vpop.eup %3598 }
 0xbcd   :  { %v1740_v50 = vpack.c.bf16 %v3599_v48, %v3599_v48 }
 0xbcf   :  { %3321 = vmatmul.mubr.bf16.vlgmr.msra.gmra.mrb[44].mxu0 %v1740_v50  ;;  %v2700_v50 = vld [vmem:[%s4547_s6] ss:$0 sm:$0xff] }
 0xbd0   :  { %3330 = vmatpush3.bf16.msra.mxu0 %v3626_v4  ;;  %3345 = vmatprep.mubr.msk.bf16.mxu0 %vm3711_vm0, %v3710_v0 }
 0xbd1   :  { %3331 = vmatprep.subr.bf16.mxu0 %v3710_v0 }
 0xbd4   :  { %3332 = vmatpush3.bf16.msra.mxu0 %v3627_v51 }
 0xbd5   :  { %3333 = vmatprep.subr.bf16.mxu0 %v3710_v0 }
 0xbd8   :  { %3334 = vmatpush3.bf16.msra.mxu0 %v3628_v52 }
 0xbd9   :  { %3335 = vmatprep.subr.bf16.mxu0 %v3710_v0 }
 0xbdc   :  { %3336 = vmatpush3.bf16.msra.mxu0 %v3629_v53 }
 0xbdd   :  { %3337 = vmatprep.subr.bf16.mxu0 %v3710_v0 }
 0xbe0   :  { %3338 = vmatpush3.bf16.msra.mxu0 %v3844_v8  ;;  %v3630_v8 = vld [vmem:[#allocation2] sm:$0xff] }
 0xbe1   :  { %3339 = vmatprep.subr.bf16.mxu0 %v3710_v0  ;;  %3350 = vmatpush3.msra.mxu1 %v3630_v8 }
 0xbe2   :  { %3354 = vmatprep.subr.bf16.mxu1 %v3710_v0 }
 0xbe4   :  { %3340 = vmatpush3.bf16.msra.mxu0 %v3855_v9  ;;  %v2698_v9 = vld [vmem:[%s4541_s0 + $0x78] sm:$0x1f] }
 0xbe5   :  { %3341 = vmatprep.subr.bf16.mxu0 %v3710_v0  ;;  %3352 = vmatmul.mubr.msk.f32.vlgmr.msra.gmra.mrb[40].mxu1 %vm85_vm1, %v2698_v9 }
 0xbe6   :  { %3355 = vmatpush3.bf16.msra.mxu1 %v3626_v4  ;;  %3370 = vmatprep.mubr.msk.bf16.mxu1 %vm3711_vm0, %v3710_v0 }
 0xbe7   :  { %3356 = vmatprep.subr.bf16.mxu1 %v3710_v0 }
 0xbe8   :  { %3342 = vmatpush3.bf16.msra.mxu0 %v3866_v10 }
 0xbe9   :  { %3343 = vmatprep.subr.bf16.mxu0 %v3710_v0 }
 0xbea   :  { %3357 = vmatpush3.bf16.msra.mxu1 %v3627_v51 }
 0xbeb   :  { %3358 = vmatprep.subr.bf16.mxu1 %v3710_v0 }
 0xbec   :  { %3344 = vmatpush3.bf16.msra.mxu0 %v3876_v11 }
 0xbed   :  { %3374 = vmatprep.subr.bf16.mxu0 %v3710_v0 }
 0xbee   :  { %3359 = vmatpush3.bf16.msra.mxu1 %v3628_v52 }
 0xbef   :  { %3360 = vmatprep.subr.bf16.mxu1 %v3710_v0 }
 0xbf2   :  { %3361 = vmatpush3.bf16.msra.mxu1 %v3629_v53 }
 0xbf3   :  { %3362 = vmatprep.subr.bf16.mxu1 %v3710_v0 }
 0xbf6   :  { %3363 = vmatpush3.bf16.msra.mxu1 %v3631_v55 }
 0xbf7   :  { %3364 = vmatprep.subr.bf16.mxu1 %v3710_v0 }
 0xbfa   :  { %3365 = vmatpush3.bf16.msra.mxu1 %v3632_v56 }
 0xbfb   :  { %3366 = vmatprep.subr.bf16.mxu1 %v3710_v0 }
 0xbfe   :  { %3367 = vmatpush3.bf16.msra.mxu1 %v3866_v10 }
 0xbff   :  { %3368 = vmatprep.subr.bf16.mxu1 %v3710_v0 }
 0xc02   :  { %3369 = vmatpush3.bf16.msra.mxu1 %v3876_v11  ;;  %v4294_v11 = vld [vmem:[%s4545_s4 + $0x8] sm:$0xff]  }
 0xc03   :  { %3394 = vmatprep.subr.bf16.mxu1 %v3710_v0 }
 0xca2   :  { %v1775_v58 = vpop.f32.mrb[44].mxu0 }
 0xca3   :  { %v1781_v59 = vadd.f32 %v1775_v58, %v1737_v57  ;;  %v3322_v60 = vpop.f32.mrb[45].mxu0 }
 0xca4   :  { %v1778_v61 = vpop.f32.mrb[46].mxu0 }
 0xca5   :  { %3600 = vtanh.f32 %v1781_v59  ;;  %v3323_v62 = vpop.f32.mrb[47].mxu0 }
 0xcaf   :  { %v3601_v63 = vpop.eup %3600 }
 0xcb0   :  { %v1858_v10 = vpack.c.bf16 %v3601_v63, %v3601_v63 }
 0xcb2   :  { %3346 = vmatmul.mubr.bf16.vlgmr.msra.gmra.mrb[48].mxu0 %v1858_v10 }
 0xcb3   :  { %3375 = vmatpush3.bf16.msra.mxu0 %v4288_v5  ;;  %3390 = vmatprep.mubr.msk.bf16.mxu0 %vm3711_vm0, %v3710_v0 }
 0xcb4   :  { %3376 = vmatprep.subr.bf16.mxu0 %v3710_v0 }
 0xcb7   :  { %3377 = vmatpush3.bf16.msra.mxu0 %v4294_v11 }
 0xcb8   :  { %3378 = vmatprep.subr.bf16.mxu0 %v3710_v0 }
 0xcbb   :  { %3379 = vmatpush3.bf16.msra.mxu0 %v4303_v17 }
 0xcbc   :  { %3380 = vmatprep.subr.bf16.mxu0 %v3710_v0 }
 0xcbf   :  { %3381 = vmatpush3.bf16.msra.mxu0 %v4310_v7 }
 0xcc0   :  { %3382 = vmatprep.subr.bf16.mxu0 %v3710_v0 }
 0xcc3   :  { %3383 = vmatpush3.bf16.msra.mxu0 %v4317_v13 }
 0xcc4   :  { %3384 = vmatprep.subr.bf16.mxu0 %v3710_v0 }
 0xcc7   :  { %3385 = vmatpush3.bf16.msra.mxu0 %v4324_v14 }
 0xcc8   :  { %3386 = vmatprep.subr.bf16.mxu0 %v3710_v0 }
 0xccb   :  { %3387 = vmatpush3.bf16.msra.mxu0 %v4331_v15 }
 0xccc   :  { %3388 = vmatprep.subr.bf16.mxu0 %v3710_v0 }
 0xccf   :  { %3389 = vmatpush3.bf16.msra.mxu0 %v4338_v16 }
 0xcd0   :  { %3414 = vmatprep.subr.bf16.mxu0 %v3710_v0 }
 0xcd2   :  { %3391 = vmatmul.mubr.bf16.vlgmr.msra.gmra.mrb[52].mxu0 %v4113_v49  ;;  %v4361_v49 = vld [vmem:[#allocation5 + $0x20] sm:$0xff]  }
 0xcd3   :  { %3415 = vmatpush3.bf16.msra.mxu0 %v4342_v18  ;;  %3430 = vmatprep.mubr.msk.bf16.mxu0 %vm3711_vm0, %v3710_v0 }
 0xcd4   :  { %3416 = vmatprep.subr.bf16.mxu0 %v3710_v0 }
 0xcd7   :  { %3417 = vmatpush3.bf16.msra.mxu0 %v4347_v19 }
 0xcd8   :  { %3418 = vmatprep.subr.bf16.mxu0 %v3710_v0 }
 0xcdb   :  { %3419 = vmatpush3.bf16.msra.mxu0 %v4353_v20 }
 0xcdc   :  { %3420 = vmatprep.subr.bf16.mxu0 %v3710_v0 }
 0xcdf   :  { %3421 = vmatpush3.bf16.msra.mxu0 %v4357_v21 }
 0xce0   :  { %3422 = vmatprep.subr.bf16.mxu0 %v3710_v0 }
 0xce3   :  { %3423 = vmatpush3.bf16.msra.mxu0 %v4361_v49 }
 0xce4   :  { %3424 = vmatprep.subr.bf16.mxu0 %v3710_v0 }
 0xce7   :  { %3425 = vmatpush3.bf16.msra.mxu0 %v4365_v22 }
 0xce8   :  { %3426 = vmatprep.subr.bf16.mxu0 %v3710_v0 }
 0xceb   :  { %3427 = vmatpush3.bf16.msra.mxu0 %v4369_v23 }
 0xcec   :  { %3428 = vmatprep.subr.bf16.mxu0 %v3710_v0 }
 0xcef   :  { %3429 = vmatpush3.bf16.msra.mxu0 %v4373_v24 }
 0xcf0   :  { %3454 = vmatprep.subr.bf16.mxu0 %v3710_v0 }
 0xcf2   :  { %3431 = vmatmul.mubr.bf16.vlgmr.msra.gmra.mrb[56].mxu0 %v3712_v12  ;;  %v1854_v12 = vpop.f32.mrb[30].mxu1 }
 0xcf3   :  { %3455 = vmatpush3.bf16.msra.mxu0 %v4342_v18  ;;  %3470 = vmatprep.mubr.msk.bf16.mxu0 %vm3711_vm0, %v3710_v0  ;;  %v3328_v25 = vpop.f32.mrb[31].mxu1  ;;  %v1855_v29 = vadd.f32 %v3633_v28, %v1854_v12 }
 0xcf4   :  { %3456 = vmatprep.subr.bf16.mxu0 %v3710_v0  ;;  %v1972_v26 = vpop.f32.mrb[40].mxu1 }
 0xcf5   :  { %v3353_v27 = vpop.f32.mrb[41].mxu1  ;;  %v1973_v41 = vadd.f32 %v3633_v28, %v1972_v26 }
 0xcf7   :  { %3457 = vmatpush3.bf16.msra.mxu0 %v4347_v19 }
 0xcf8   :  { %3458 = vmatprep.subr.bf16.mxu0 %v3710_v0 }
 0xcfb   :  { %3459 = vmatpush3.bf16.msra.mxu0 %v4353_v20 }
 0xcfc   :  { %3460 = vmatprep.subr.bf16.mxu0 %v3710_v0 }
 0xcff   :  { %3461 = vmatpush3.bf16.msra.mxu0 %v4357_v21 }
 0xd00   :  { %3462 = vmatprep.subr.bf16.mxu0 %v3710_v0 }
 0xd03   :  { %3463 = vmatpush3.bf16.msra.mxu0 %v4361_v49 }
 0xd04   :  { %3464 = vmatprep.subr.bf16.mxu0 %v3710_v0 }
 0xd07   :  { %3465 = vmatpush3.bf16.msra.mxu0 %v4365_v22 }
 0xd08   :  { %3466 = vmatprep.subr.bf16.mxu0 %v3710_v0 }
 0xd0b   :  { %3467 = vmatpush3.bf16.msra.mxu0 %v4369_v23 }
 0xd0c   :  { %3468 = vmatprep.subr.bf16.mxu0 %v3710_v0 }
 0xd0f   :  { %3469 = vmatpush3.bf16.msra.mxu0 %v4373_v24 }
 0xd10   :  { %3494 = vmatprep.subr.bf16.mxu0 %v3710_v0 }
 0xd85   :  { %v1893_v30 = vpop.f32.mrb[48].mxu0 }
 0xd86   :  { %v1899_v31 = vadd.f32 %v1893_v30, %v1855_v29  ;;  %v3347_v32 = vpop.f32.mrb[49].mxu0 }
 0xd87   :  { %v1896_v33 = vpop.f32.mrb[50].mxu0 }
 0xd88   :  { %3602 = vtanh.f32 %v1899_v31  ;;  %v3348_v1 = vpop.f32.mrb[51].mxu0 }
 0xd92   :  { %v3603_v2 = vpop.eup %3602 }
 0xd93   :  { %v1976_v3 = vpack.c.bf16 %v3603_v2, %v3603_v2 }
 0xd95   :  { %3371 = vmatmul.mubr.bf16.vlgmr.msra.gmra.mrb[44].mxu1 %v1976_v3 }
 0xd96   :  { %3395 = vmatpush3.bf16.msra.mxu1 %v4288_v5  ;;  %3410 = vmatprep.mubr.msk.bf16.mxu1 %vm3711_vm0, %v3710_v0 }
 0xd97   :  { %3396 = vmatprep.subr.bf16.mxu1 %v3710_v0 }
 0xd9a   :  { %3397 = vmatpush3.bf16.msra.mxu1 %v4294_v11 }
 0xd9b   :  { %3398 = vmatprep.subr.bf16.mxu1 %v3710_v0 }
 0xd9e   :  { %3399 = vmatpush3.bf16.msra.mxu1 %v4303_v17 }
 0xd9f   :  { %3400 = vmatprep.subr.bf16.mxu1 %v3710_v0 }
 0xda2   :  { %3401 = vmatpush3.bf16.msra.mxu1 %v4310_v7 }
 0xda3   :  { %3402 = vmatprep.subr.bf16.mxu1 %v3710_v0 }
 0xda5   :  { %v2124_v6 = vpop.f32.mrb[52].mxu0 }
 0xda6   :  { %v3392_v34 = vpop.f32.mrb[53].mxu0  ;;  %3403 = vmatpush3.bf16.msra.mxu1 %v4317_v13  ;;  %v4439_v4 = vadd.f32 %v2700_v50, %v2124_v6 }
 0xda7   :  { %v2127_v35 = vpop.f32.mrb[54].mxu0  ;;  %3404 = vmatprep.subr.bf16.mxu1 %v3710_v0 }
 0xda8   :  { %v3393_v36 = vpop.f32.mrb[55].mxu0 }
 0xdaa   :  { %3405 = vmatpush3.bf16.msra.mxu1 %v4324_v14 }
 0xdab   :  { %3406 = vmatprep.subr.bf16.mxu1 %v3710_v0 }
 0xdae   :  { %3407 = vmatpush3.bf16.msra.mxu1 %v4331_v15 }
 0xdaf   :  { %3408 = vmatprep.subr.bf16.mxu1 %v3710_v0 }
 0xdb2   :  { %3409 = vmatpush3.bf16.msra.mxu1 %v4338_v16 }
 0xdb3   :  { %3434 = vmatprep.subr.bf16.mxu1 %v3710_v0 }
 0xdc5   :  { %v2269_v37 = vpop.f32.mrb[56].mxu0 }
 0xdc6   :  { %v3432_v38 = vpop.f32.mrb[57].mxu0  ;;  %v2276_v51 = vrot.slane %v2269_v37, 1  ;;  %v2279_v52 = vadd.f32 %v2269_v37, %v4439_v4 }
 0xdc7   :  { %v2272_v39 = vpop.f32.mrb[58].mxu0 }
 0xdc8   :  { %v3433_v40 = vpop.f32.mrb[59].mxu0  ;;  %v3566_v39 = vld [vmem:[%s4548_s7] sm:$0xff]  }
 0xdc9   :  { %v3567_v40 = vld [vmem:[%s4548_s7 + $0x8] sm:$0xff]  }
 0xe68   :  { %v2011_v42 = vpop.f32.mrb[44].mxu1 }
 0xe69   :  { %v2017_v43 = vadd.f32 %v2011_v42, %v1973_v41  ;;  %v3372_v44 = vpop.f32.mrb[45].mxu1 }
 0xe6a   :  { %v2014_v45 = vpop.f32.mrb[46].mxu1 }
 0xe6b   :  { %3604 = vtanh.f32 %v2017_v43  ;;  %v3373_v46 = vpop.f32.mrb[47].mxu1 }
 0xe6c   :  { %3606 = vtanh.f32 %v2279_v52 }
 0xe75   :  { %v3605_v47 = vpop.eup %3604 }
 0xe76   :  { %v2130_v48 = vpack.c.bf16 %v3605_v47, %v3605_v47  ;;  %v3607_v57 = vpop.eup %3606 }
 0xe77   :  { %v2283_v59 = vpack.c.bf16 %v3607_v57, %v3607_v57 }
 0xe78   :  { %3411 = vmatmul.mubr.bf16.vlgmr.msra.gmra.mrb[48].mxu1 %v2130_v48 }
 0xe79   :  { %3435 = vmatpush3.bf16.msra.mxu1 %v4342_v18  ;;  %3450 = vmatprep.mubr.msk.bf16.mxu1 %vm3711_vm0, %v3710_v0  ;;  %v2287_v62 = vunpack.c.l.b16 %v2283_v59  ;;  %v3568_v59 = vld [vmem:[%s4548_s7 + $0x10] sm:$0xff]  }
 0xe7a   :  { %3436 = vmatprep.subr.bf16.mxu1 %v3710_v0 }
 0xe7d   :  { %3437 = vmatpush3.bf16.msra.mxu1 %v4347_v19 }
 0xe7e   :  { %3438 = vmatprep.subr.bf16.mxu1 %v3710_v0 }
 0xe81   :  { %3439 = vmatpush3.bf16.msra.mxu1 %v4353_v20 }
 0xe82   :  { %3440 = vmatprep.subr.bf16.mxu1 %v3710_v0 }
 0xe85   :  { %3441 = vmatpush3.bf16.msra.mxu1 %v4357_v21 }
 0xe86   :  { %3442 = vmatprep.subr.bf16.mxu1 %v3710_v0 }
 0xe89   :  { %3443 = vmatpush3.bf16.msra.mxu1 %v4361_v49 }
 0xe8a   :  { %3444 = vmatprep.subr.bf16.mxu1 %v3710_v0 }
 0xe8d   :  { %3445 = vmatpush3.bf16.msra.mxu1 %v4365_v22 }
 0xe8e   :  { %3446 = vmatprep.subr.bf16.mxu1 %v3710_v0 }
 0xe91   :  { %3447 = vmatpush3.bf16.msra.mxu1 %v4369_v23 }
 0xe92   :  { %3448 = vmatprep.subr.bf16.mxu1 %v3710_v0 }
 0xe95   :  { %3449 = vmatpush3.bf16.msra.mxu1 %v4373_v24 }
 0xe96   :  { %3474 = vmatprep.subr.bf16.mxu1 %v3710_v0 }
 0xf4b   :  { %v2165_v53 = vpop.f32.mrb[48].mxu1 }
 0xf4c   :  { %v4442_v54 = vadd.f32 %v2700_v50, %v2165_v53  ;;  %v3412_v8 = vpop.f32.mrb[49].mxu1 }
 0xf4d   :  { %v2168_v9 = vpop.f32.mrb[50].mxu1 }
 0xf4e   :  { %v2280_v55 = vadd.f32 %v2276_v51, %v4442_v54  ;;  %v3413_v56 = vpop.f32.mrb[51].mxu1 }
 0xf50   :  { %3608 = vtanh.f32 %v2280_v55 }
 0xf5a   :  { %v3609_v58 = vpop.eup %3608 }
 0xf5b   :  { %v2284_v60 = vpack.c.bf16 %v3609_v58, %v3609_v58 }
 0xf5d   :  { %v2288_v61 = vunpack.c.l.b16 %v2284_v60  ;;  %v3569_v60 = vld [vmem:[%s4548_s7 + $0x18] sm:$0xff]  }
 0xf5f   :  { %v2289_v63 = vrot.slane %v2288_v61, 7  ;;  %v3570_v61 = vld [vmem:[%s4548_s7 + $0x20] sm:$0xff]  }
 0xf61   :  { %v2291_v5 = vsel %vm2290_vm2, %v2289_v63, %v2287_v62  ;;  %v3571_v62 = vld [vmem:[%s4548_s7 + $0x28] sm:$0xff]   ;;  %v3572_v63 = vld [vmem:[%s4548_s7 + $0x30] sm:$0xff]  }
 0xf62   :  { %v2292_v10 = vpack.c.b16 %v2291_v5, %v2291_v5  ;;  %v3573_v5 = vld [vmem:[%s4548_s7 + $0x38] sm:$0xff]  }
 0xf64   :  { %3451 = vmatmul.mubr.bf16.vlgmr.msra.gmra.mrb[52].mxu1 %v2292_v10 }
 0xf65   :  { %3475 = vmatpush3.bf16.msra.mxu1 %v4342_v18  ;;  %3490 = vmatprep.mubr.msk.bf16.mxu1 %vm3711_vm0, %v3710_v0 }
 0xf66   :  { %3476 = vmatprep.subr.bf16.mxu1 %v3710_v0 }
 0xf69   :  { %3477 = vmatpush3.bf16.msra.mxu1 %v4347_v19 }
 0xf6a   :  { %3478 = vmatprep.subr.bf16.mxu1 %v3710_v0 }
 0xf6d   :  { %3479 = vmatpush3.bf16.msra.mxu1 %v4353_v20 }
 0xf6e   :  { %3480 = vmatprep.subr.bf16.mxu1 %v3710_v0 }
 0xf71   :  { %3481 = vmatpush3.bf16.msra.mxu1 %v4357_v21 }
 0xf72   :  { %3482 = vmatprep.subr.bf16.mxu1 %v3710_v0 }
 0xf75   :  { %3483 = vmatpush3.bf16.msra.mxu1 %v4361_v49 }
 0xf76   :  { %3484 = vmatprep.subr.bf16.mxu1 %v3710_v0 }
 0xf79   :  { %3485 = vmatpush3.bf16.msra.mxu1 %v4365_v22 }
 0xf7a   :  { %3486 = vmatprep.subr.bf16.mxu1 %v3710_v0 }
 0xf7d   :  { %3487 = vmatpush3.bf16.msra.mxu1 %v4369_v23 }
 0xf7e   :  { %3488 = vmatprep.subr.bf16.mxu1 %v3710_v0 }
 0xf81   :  { %3489 = vmatpush3.bf16.msra.mxu1 %v4373_v24 }
 0xf82   :  { %3514 = vmatprep.subr.bf16.mxu1 %v3710_v0 }
0x1037   :  { %v2328_v11 = vpop.f32.mrb[52].mxu1 }
0x1038   :  { %v2335_v17 = vrot.slane %v2328_v11, 7  ;;  %v2339_v7 = vadd.f32 %v2328_v11, %v4442_v54  ;;  %v3452_v13 = vpop.f32.mrb[53].mxu1 }
0x1039   :  { %v2331_v14 = vpop.f32.mrb[54].mxu1 }
0x103a   :  { %v2338_v15 = vadd.f32 %v2335_v17, %v4439_v4  ;;  %3610 = vtanh.f32 %v2339_v7  ;;  %v3453_v16 = vpop.f32.mrb[55].mxu1 }
0x103c   :  { %3612 = vtanh.f32 %v2338_v15 }
0x1044   :  { %v3611_v12 = vpop.eup %3610 }
0x1045   :  { %v2343_v27 = vpack.c.bf16 %v3611_v12, %v3611_v12 }
0x1046   :  { %v3613_v25 = vpop.eup %3612 }
0x1047   :  { %v2342_v26 = vpack.c.bf16 %v3613_v25, %v3613_v25  ;;  %v2347_v29 = vunpack.c.l.b16 %v2343_v27 }
0x1049   :  { %v2346_v28 = vunpack.c.l.b16 %v2342_v26 }
0x104b   :  { %v2348_v30 = vrot.slane %v2346_v28, 1 }
0x104d   :  { %v2349_v31 = vsel %vm2290_vm2, %v2347_v29, %v2348_v30 }
0x104e   :  { %v2350_v32 = vpack.c.b16 %v2349_v31, %v2349_v31 }
0x1050   :  { %3471 = vmatmul.mubr.bf16.vlgmr.msra.gmra.mrb[60].mxu0 %v2350_v32 }
0x1051   :  { %3495 = vmatpush3.bf16.msra.mxu0 %v4342_v18  ;;  %3510 = vmatprep.mubr.msk.bf16.mxu0 %vm3711_vm0, %v3710_v0 }
0x1052   :  { %3496 = vmatprep.subr.bf16.mxu0 %v3710_v0 }
0x1055   :  { %3497 = vmatpush3.bf16.msra.mxu0 %v4347_v19 }
0x1056   :  { %3498 = vmatprep.subr.bf16.mxu0 %v3710_v0 }
0x1059   :  { %3499 = vmatpush3.bf16.msra.mxu0 %v4353_v20 }
0x105a   :  { %3500 = vmatprep.subr.bf16.mxu0 %v3710_v0 }
0x105d   :  { %3501 = vmatpush3.bf16.msra.mxu0 %v4357_v21 }
0x105e   :  { %3502 = vmatprep.subr.bf16.mxu0 %v3710_v0 }
0x1061   :  { %3503 = vmatpush3.bf16.msra.mxu0 %v4361_v49 }
0x1062   :  { %3504 = vmatprep.subr.bf16.mxu0 %v3710_v0 }
0x1065   :  { %3505 = vmatpush3.bf16.msra.mxu0 %v4365_v22 }
0x1066   :  { %3506 = vmatprep.subr.bf16.mxu0 %v3710_v0 }
0x1069   :  { %3507 = vmatpush3.bf16.msra.mxu0 %v4369_v23 }
0x106a   :  { %3508 = vmatprep.subr.bf16.mxu0 %v3710_v0 }
0x106d   :  { %3509 = vmatpush3.bf16.msra.mxu0 %v4373_v24 }
0x1123   :  { %v2386_v18 = vpop.f32.mrb[60].mxu0 }
0x1124   :  { %v2393_v19 = vrot.slane %v2386_v18, 6  ;;  %v2394_v20 = vrot.slane %v2386_v18, 7  ;;  %v3472_v21 = vpop.f32.mrb[61].mxu0 }
0x1125   :  { %v2389_v33 = vpop.f32.mrb[62].mxu0 }
0x1126   :  { %v2397_v1 = vadd.f32 %v2393_v19, %v4439_v4  ;;  %v2398_v49 = vadd.f32 %v2394_v20, %v4442_v54  ;;  %v3473_v2 = vpop.f32.mrb[63].mxu0 }
0x1128   :  { %3614 = vtanh.f32 %v2397_v1 }
0x1129   :  { %3616 = vtanh.f32 %v2398_v49 }
0x1132   :  { %v3615_v22 = vpop.eup %3614 }
0x1133   :  { %v3617_v3 = vpop.eup %3616  ;;  %v2401_v6 = vpack.c.bf16 %v3615_v22, %v3615_v22 }
0x1134   :  { %v2402_v23 = vpack.c.bf16 %v3617_v3, %v3617_v3 }
0x1135   :  { %v2405_v34 = vunpack.c.l.b16 %v2401_v6 }
0x1136   :  { %v2406_v35 = vunpack.c.l.b16 %v2402_v23 }
0x1137   :  { %v2407_v36 = vrot.slane %v2405_v34, 2 }
0x1138   :  { %v2408_v24 = vrot.slane %v2406_v35, 1 }
0x113a   :  { %v2409_v37 = vsel %vm2290_vm2, %v2408_v24, %v2407_v36 }
0x113b   :  { %v2410_v38 = vpack.c.b16 %v2409_v37, %v2409_v37 }
0x113d   :  { %3491 = vmatmul.mubr.bf16.vlgmr.msra.gmra.mrb[56].mxu1 %v2410_v38 }
0x113e   :  { %3530 = vmatprep.mubr.msk.bf16.mxu1 %vm3711_vm0, %v3710_v0  ;;  %3515 = vmatpush3.bf16.msra.mxu1 %v3566_v39 }
0x113f   :  { %3516 = vmatprep.subr.bf16.mxu1 %v3710_v0 }
0x1142   :  { %3517 = vmatpush3.bf16.msra.mxu1 %v3567_v40 }
0x1143   :  { %3518 = vmatprep.subr.bf16.mxu1 %v3710_v0 }
0x1146   :  { %3519 = vmatpush3.bf16.msra.mxu1 %v3568_v59 }
0x1147   :  { %3520 = vmatprep.subr.bf16.mxu1 %v3710_v0 }
0x114a   :  { %3521 = vmatpush3.bf16.msra.mxu1 %v3569_v60 }
0x114b   :  { %3522 = vmatprep.subr.bf16.mxu1 %v3710_v0 }
0x114e   :  { %3523 = vmatpush3.bf16.msra.mxu1 %v3570_v61 }
0x114f   :  { %3524 = vmatprep.subr.bf16.mxu1 %v3710_v0 }
0x1152   :  { %3525 = vmatpush3.bf16.msra.mxu1 %v3571_v62 }
0x1153   :  { %3526 = vmatprep.subr.bf16.mxu1 %v3710_v0 }
0x1156   :  { %3527 = vmatpush3.bf16.msra.mxu1 %v3572_v63 }
0x1157   :  { %3528 = vmatprep.subr.bf16.mxu1 %v3710_v0 }
0x115a   :  { %3529 = vmatpush3.bf16.msra.mxu1 %v3573_v5 }
0x1210   :  { %v2446_v41 = vpop.f32.mrb[56].mxu1 }
0x1211   :  { %v2453_v42 = vrot.slane %v2446_v41, 5  ;;  %v2454_v43 = vrot.slane %v2446_v41, 6  ;;  %v3492_v44 = vpop.f32.mrb[57].mxu1 }
0x1212   :  { %v2449_v45 = vpop.f32.mrb[58].mxu1 }
0x1213   :  { %v2457_v46 = vadd.f32 %v2453_v42, %v4439_v4  ;;  %v2458_v47 = vadd.f32 %v2454_v43, %v4442_v54  ;;  %v3493_v48 = vpop.f32.mrb[59].mxu1 }
0x1215   :  { %3618 = vtanh.f32 %v2457_v46 }
0x1216   :  { %3620 = vtanh.f32 %v2458_v47 }
0x121f   :  { %v3619_v50 = vpop.eup %3618 }
0x1220   :  { %v3621_v51 = vpop.eup %3620  ;;  %v2461_v52 = vpack.c.bf16 %v3619_v50, %v3619_v50 }
0x1221   :  { %v2462_v53 = vpack.c.bf16 %v3621_v51, %v3621_v51 }
0x1222   :  { %v2465_v8 = vunpack.c.l.b16 %v2461_v52 }
0x1223   :  { %v2466_v9 = vunpack.c.l.b16 %v2462_v53 }
0x1224   :  { %v2467_v55 = vrot.slane %v2465_v8, 3 }
0x1225   :  { %v2468_v56 = vrot.slane %v2466_v9, 2 }
0x1227   :  { %v2469_v57 = vsel %vm2290_vm2, %v2468_v56, %v2467_v55 }
0x1228   :  { %v2470_v58 = vpack.c.b16 %v2469_v57, %v2469_v57 }
0x122a   :  { %3511 = vmatmul.mubr.bf16.vlgmr.msra.gmra.mrb[64].mxu0 %v2470_v58 }
0x12fd   :  { %v2506_v10 = vpop.f32.mrb[64].mxu0 }
0x12fe   :  { %v2513_v11 = vrot.slane %v2506_v10, 4  ;;  %v2514_v17 = vrot.slane %v2506_v10, 5  ;;  %v3512_v7 = vpop.f32.mrb[65].mxu0 }
0x12ff   :  { %v2509_v13 = vpop.f32.mrb[66].mxu0 }
0x1300   :  { %v2517_v14 = vadd.f32 %v2513_v11, %v4439_v4  ;;  %v2518_v15 = vadd.f32 %v2514_v17, %v4442_v54  ;;  %v3513_v16 = vpop.f32.mrb[67].mxu0  ;;  %v2717_v4 = vld [vmem:[%s4549_s8] ss:$0 sm:$0xff] }
0x1302   :  { %3622 = vtanh.f32 %v2517_v14 }
0x1303   :  { %3624 = vtanh.f32 %v2518_v15 }
0x130c   :  { %v3623_v12 = vpop.eup %3622 }
0x130d   :  { %v3625_v25 = vpop.eup %3624  ;;  %v2521_v0 = vpack.c.bf16 %v3623_v12, %v3623_v12 }
0x130e   :  { %v2522_v26 = vpack.c.bf16 %v3625_v25, %v3625_v25 }
0x130f   :  { %v2548_v27 = vunpack.c.l.b16 %v2521_v0 }
0x1310   :  { %v2549_v28 = vunpack.c.l.b16 %v2522_v26 }
0x1311   :  { %v2550_v29 = vrot.slane %v2548_v27, 4 }
0x1312   :  { %v2551_v30 = vrot.slane %v2549_v28, 3 }
0x1314   :  { %v2552_v31 = vsel %vm2290_vm2, %v2551_v30, %v2550_v29 }
0x1315   :  { %v2553_v32 = vpack.c.b16 %v2552_v31, %v2552_v31 }
0x1317   :  { %3531 = vmatmul.mubr.bf16.vlgmr.msra.gmra.mrb[60].mxu1 %v2553_v32 }
0x13ea   :  { %v2637_v54 = vpop.f32.mrb[60].mxu1 }
0x13eb   :  { %v2638_v18 = vadd.f32 %v2717_v4, %v2637_v54  ;;  %v3532_v19 = vpop.f32.mrb[61].mxu1 }
0x13ec   :  { %v2640_v20 = vpop.f32.mrb[62].mxu1 }
0x13ed   :  { %2643 = vst [vmem:[#allocation7] sm:$0x3] %v2638_v18  ;;  %v3533_v21 = vpop.f32.mrb[63].mxu1 }
0x13ee   :  { %3689 = shalt.err (!%p3686_p6)
}
0x13ef   :  { %s3690_s8 = scalar_lea.hbm %s4550_s9, 32 }
0x13f0   :  { %p3691_p7 = scmp.ne.s32.totalorder %s4550_s9, %s3690_s8  ;;  %p3694_p8 = scmp.lt.u32.totalorder %s3690_s8, %s4550_s9 }
0x13f2   :  { %p3696_p9 = pnand %p3694_p8, %p3691_p7 }
0x13f4   :  { %3699 = shalt.err (!%p3696_p9)
}
0x13f5   :  { %2653 = dma.vmem_to_hbm [thread:$0]  %s2651_s15, 32, %s4550_s9, [#allocation4]  }
0x13f6   :  { %3704 = dma.done.wait [#allocation4], 32  }
0x13f7   :  { %3705 = vsyncadd [#allocation4], 4294967264 }
0x13f8   :  { %2657 = vsyncpa [#allocation3], 1 }
0x13f9   :  { %2658 = vsyncpa [#allocation6], 1 }
0x13fa   :  { %2659 = vsyncpa [#allocation4], 1 }

</bundles_post_ra>
